<compile_context>
chip_gen: v6e
topology: v6e:2x2x1
jax: 0.10.0
libtpu: 0.0.40
codegen_flags: <defaults>
</compile_context>

<pallas_src>
import math
import functools

import jax
import jax.numpy as jnp
import numpy as np
from jax.experimental import pallas as pl
from jax.experimental.pallas import tpu as pltpu


# ---------------------------------------------------------------------------
# Fused Pallas kernel: all layers + classifier head in one invocation
# ---------------------------------------------------------------------------
def make_fused_kernel(B, L, D, H, q_len, n_layers):
    HD = H * D
    P = q_len - 1                               # conv left zero-pad rows (semantic)
    Ppad = ((P + 7) // 8) * 8 if P > 0 else 0   # pad rounded up to sublane multiple
    BL = B * L
    NEG = -1e9                                  # python float -> weak literal
    bf16 = jnp.bfloat16

    def layernorm(x, g, b):                     # OpenAI-style LN, eps inside sqrt, f32
        mu = jnp.mean(x, axis=-1, keepdims=True)
        var = jnp.mean((x - mu) ** 2, axis=-1, keepdims=True)
        return (x - mu) * jax.lax.rsqrt(var + 1e-5) * g + b

    def kernel(h0_ref,
               wqkv_ref, bqkv_ref, wpr_ref, bpr_ref,
               ln1g_ref, ln1b_ref, wfc_ref, bfc_ref, wp2_ref, bp2_ref,
               ln2g_ref, ln2b_ref, hw_ref, hb_ref,
               out_ref, hpad_ref):
        # ---- resident padded activation (B, L+Ppad, D) in VMEM ------------------
        # first Ppad rows are zero and never rewritten; activation lives at [Ppad:]
        if Ppad > 0:
            hpad_ref[:, :Ppad, :] = jnp.zeros((B, Ppad, D), jnp.float32)
        hpad_ref[:, Ppad:, :] = h0_ref[...]

        # ---- loop-invariant weights (bf16) and pre-broadcast biases / LN params --
        w_taps = [wqkv_ref[j] for j in range(q_len)]                  # (D, 3*HD) each
        wpr_h = [wpr_ref[h * D:(h + 1) * D, :] for h in range(H)]     # (D, D) each
        wfc, wp2 = wfc_ref[...], wp2_ref[...]
        bqkv = jnp.broadcast_to(bqkv_ref[...], (BL, 3 * HD))
        bpr = jnp.broadcast_to(bpr_ref[...], (BL, D))
        bfc = jnp.broadcast_to(bfc_ref[...], (BL, 4 * D))
        bp2 = jnp.broadcast_to(bp2_ref[...], (BL, D))
        ln1g = jnp.broadcast_to(ln1g_ref[...], (BL, D))
        ln1b = jnp.broadcast_to(ln1b_ref[...], (BL, D))
        ln2g = jnp.broadcast_to(ln2g_ref[...], (BL, D))
        ln2b = jnp.broadcast_to(ln2b_ref[...], (BL, D))

        row = jax.lax.broadcasted_iota(jnp.int32, (L, L), 0)
        col = jax.lax.broadcasted_iota(jnp.int32, (L, L), 1)
        causal = col <= row                    # (L, L), broadcasts over (H*B, L, L)

        def layer_body(_, carry):
            x2 = hpad_ref[:, Ppad:, :].reshape(BL, D)     # sublane-aligned load
            x2_bf = x2.astype(bf16)

            # fused causal Conv1d (q,k) + V projection: sum over taps; the last
            # (current-step) tap also carries the value-projection columns.
            qkv = jnp.dot(x2_bf, w_taps[q_len - 1],
                          preferred_element_type=jnp.float32)         # (BL, 3*HD)
            for j in range(q_len - 1):
                xj = hpad_ref[:, Ppad - P + j:Ppad - P + j + L, :].reshape(BL, D)
                qkv += jnp.dot(xj.astype(bf16), w_taps[j],
                               preferred_element_type=jnp.float32)
            qkv = qkv + bqkv          # 1/sqrt(D) scale already folded into q cols

            # fold heads into the leading batch axis -> one batched attention einsum
            qh = jnp.stack([qkv[:, h * D:(h + 1) * D].reshape(B, L, D)
                            for h in range(H)], axis=0).reshape(H * B, L, D).astype(bf16)
            kh = jnp.stack([qkv[:, HD + h * D:HD + (h + 1) * D].reshape(B, L, D)
                            for h in range(H)], axis=0).reshape(H * B, L, D).astype(bf16)
            vh = jnp.stack([qkv[:, 2 * HD + h * D:2 * HD + (h + 1) * D].reshape(B, L, D)
                            for h in range(H)], axis=0).reshape(H * B, L, D).astype(bf16)

            s = jnp.einsum('bld,bmd->blm', qh, kh,
                           preferred_element_type=jnp.float32)        # (H*B, L, L)
            s = jnp.where(causal, s, NEG)
            m = jnp.max(s, axis=-1, keepdims=True)
            e = jnp.exp(s - m)
            p = e * pl.reciprocal(jnp.sum(e, axis=-1, keepdims=True), approx=True)
            o = jnp.einsum('blm,bmd->bld', p.astype(bf16), vh,
                           preferred_element_type=jnp.float32)        # (H*B, L, D)
            o = o.reshape(H, BL, D)

            # head merge + output projection as per-head accumulated matmuls
            # (equivalent to concat(o_h) @ wpr, without any transpose/concat)
            attn = bpr
            for h in range(H):
                attn = attn + jnp.dot(o[h].astype(bf16), wpr_h[h],
                                      preferred_element_type=jnp.float32)

            # residual + LayerNorm 1 (f32)
            ln1 = layernorm(x2 + attn, ln1g, ln1b)

            # MLP (relu), bf16 matmul operands / f32 accumulation
            hfc = jnp.dot(ln1.astype(bf16), wfc,
                          preferred_element_type=jnp.float32) + bfc
            hfc = jnp.maximum(hfc, 0.0)
            hp2 = jnp.dot(hfc.astype(bf16), wp2,
                          preferred_element_type=jnp.float32) + bp2

            # residual + LayerNorm 2, write back to the resident activation
            hnew = layernorm(ln1 + hp2, ln2g, ln2b)
            hpad_ref[:, Ppad:, :] = hnew.reshape(B, L, D)
            return carry

        # full unroll only for shallow nets (vreg pressure / code size otherwise)
        jax.lax.fori_loop(0, n_layers, layer_body, 0, unroll=(n_layers <= 4))

        # fused classifier head: mean over time + Linear (f32, tiny)
        hm = jnp.mean(hpad_ref[:, Ppad:, :], axis=1)                   # (B, D)
        out_ref[...] = jnp.dot(hm, hw_ref[...],
                               preferred_element_type=jnp.float32) + hb_ref[...]

    return kernel


# ---------------------------------------------------------------------------
# Wrapper: one pallas_call for the whole forward pass
# ---------------------------------------------------------------------------
def decoder_transformer_forward(x, params, H, q_len, scale, n_layers):
    """x: (B, L, input_dim) -> logits (B, num_classes)."""
    B, L, in_dim = x.shape
    po = params['po']                                    # (win_len, n_embd)
    n_embd = po.shape[1]
    D = in_dim + n_embd
    HD = H * D
    emb = jnp.broadcast_to(po[:L][None], (B, L, n_embd))
    h0 = jnp.concatenate([x.astype(jnp.float32), emb], axis=2)   # (B, L, D)

    p = params['block']
    C = params['head_w'].shape[1]
    bf16 = jnp.bfloat16

    # Combined per-tap weight (q_len, D, 3*HD), columns = [q | k | v]:
    #   * 1/sqrt(D) attention scale folded into q columns / q bias,
    #   * value projection lives only in the last (current-step) tap.
    wq = p['wqk'][..., :HD]
    wk = p['wqk'][..., HD:]
    bq, bk = p['bqk'][:HD], p['bqk'][HD:]
    if scale:
        inv = 1.0 / math.sqrt(D)
        wq = wq * inv
        bq = bq * inv
    wv_taps = jnp.zeros((q_len, D, HD), jnp.float32).at[q_len - 1].set(p['wv'])
    wqkv = jnp.concatenate([wq, wk, wv_taps], axis=-1).astype(bf16)   # (q_len, D, 3HD)
    bqkv = jnp.concatenate([bq, bk, p['bv']], axis=0)[None]            # (1, 3HD)

    args = (
        h0,
        wqkv, bqkv,
        p['wpr'].astype(bf16), p['bpr'][None],
        p['ln1g'][None], p['ln1b'][None],
        p['wfc'].astype(bf16), p['bfc'][None],
        p['wp2'].astype(bf16), p['bp2'][None],
        p['ln2g'][None], p['ln2b'][None],
        params['head_w'], params['head_b'][None],
    )

    P = q_len - 1
    Ppad = ((P + 7) // 8) * 8 if P > 0 else 0
    kern = make_fused_kernel(B, L, D, H, q_len, n_layers)
    return pl.pallas_call(
        kern,
        out_shape=jax.ShapeDtypeStruct((B, C), jnp.float32),
        scratch_shapes=[
            pltpu.VMEM((B, L + Ppad, D), jnp.float32),   # resident padded activation
        ],
    )(*args)


# ---------------------------------------------------------------------------
# Pure-JAX f32 reference (mirrors the PyTorch forward) for validation
# ---------------------------------------------------------------------------
def ref_forward(x, params, H, q_len, scale, n_layers):
    B, L, _ = x.shape
    po = params['po']
    h = jnp.concatenate([x, jnp.broadcast_to(po[:L][None], (B, L, po.shape[1]))], axis=2)
    D = h.shape[-1]
    p = params['block']
    for _ in range(n_layers):
        v = h @ p['wv'] + p['bv']
        xpad = jnp.pad(h, ((0, 0), (q_len - 1, 0), (0, 0)))
        qk = p['bqk'] + sum(jnp.einsum('btd,de->bte', xpad[:, j:j + L], p['wqk'][j])
                            for j in range(q_len))
        q, k = qk[..., :H * D], qk[..., H * D:]
        qh = q.reshape(B, L, H, D)
        kh = k.reshape(B, L, H, D)
        vh = v.reshape(B, L, H, D)
        s = jnp.einsum('bqhd,bkhd->bhqk', qh, kh)
        if scale:
            s = s / math.sqrt(D)
        mask = jnp.tril(jnp.ones((L, L), jnp.float32))
        s = s * mask + (-1e9) * (1 - mask)
        a = jax.nn.softmax(s, axis=-1)
        o = jnp.einsum('bhqk,bkhd->bqhd', a, vh).reshape(B, L, H * D)
        attn = o @ p['wpr'] + p['bpr']
        h1 = h + attn
        mu = h1.mean(-1, keepdims=True)
        var = ((h1 - mu) ** 2).mean(-1, keepdims=True)
        ln1 = (h1 - mu) / jnp.sqrt(var + 1e-5) * p['ln1g'] + p['ln1b']
        hfc = jax.nn.relu(ln1 @ p['wfc'] + p['bfc'])
        hp2 = hfc @ p['wp2'] + p['bp2']
        h2 = ln1 + hp2
        mu2 = h2.mean(-1, keepdims=True)
        var2 = ((h2 - mu2) ** 2).mean(-1, keepdims=True)
        h = (h2 - mu2) / jnp.sqrt(var2 + 1e-5) * p['ln2g'] + p['ln2b']
    return h.mean(axis=1) @ params['head_w'] + params['head_b']


# ---------------------------------------------------------------------------
# Deterministic parameter initialisation (mirrors the module's __init__ rules)
# ---------------------------------------------------------------------------
def init_params(key, input_dim, n_embd, H, q_len, win_len, num_classes):
    D = input_dim + n_embd          # block-level embedding size
    ks = jax.random.split(key, 8)
    f32 = jnp.float32
    params = {
        # nn.Embedding(win_len, n_embd): normal std 0.02
        'po': 0.02 * jax.random.normal(ks[0], (win_len, n_embd), f32),
        'block': {
            # nn.Conv1d -> normal(0, 0.01), bias 0 ; stored as (q_len, D, 2*H*D)
            'wqk': 0.01 * jax.random.normal(ks[1], (q_len, D, 2 * H * D), f32),
            'bqk': jnp.zeros((2 * H * D,), f32),
            # Conv1D (rf=1) -> normal std 0.02, bias 0
            'wv': 0.02 * jax.random.normal(ks[2], (D, H * D), f32),
            'bv': jnp.zeros((H * D,), f32),
            'wpr': 0.02 * jax.random.normal(ks[3], (H * D, D), f32),
            'bpr': jnp.zeros((D,), f32),
            'ln1g': jnp.ones((D,), f32), 'ln1b': jnp.zeros((D,), f32),
            'wfc': 0.02 * jax.random.normal(ks[4], (D, 4 * D), f32),
            'bfc': jnp.zeros((4 * D,), f32),
            'wp2': 0.02 * jax.random.normal(ks[5], (4 * D, D), f32),
            'bp2': jnp.zeros((D,), f32),
            'ln2g': jnp.ones((D,), f32), 'ln2b': jnp.zeros((D,), f32),
        },
        # nn.Linear(D, num_classes) -> normal(0, 0.01), bias 0 (stored transposed)
        'head_w': 0.01 * jax.random.normal(ks[6], (D, num_classes), f32),
        'head_b': jnp.zeros((num_classes,), f32),
    }
    return params


# ---------------------------------------------------------------------------
if __name__ == "__main__":
    # small config: batch=2, seq(win_len)=8, input_dim=4, n_embd=12 -> D=16,
    # n_head=2, q_len=2, 2 layers, 8 classes, scale_att=True, sparse=False.
    B, L, input_dim, n_embd = 2, 8, 4, 12
    H, q_len, n_layers, num_classes = 2, 2, 2, 8
    scale = True

    key = jax.random.PRNGKey(0)
    kx, kp = jax.random.split(key)
    x = jax.random.normal(kx, (B, L, input_dim), jnp.float32)
    params = init_params(kp, input_dim, n_embd, H, q_len, L, num_classes)

    fwd = jax.jit(functools.partial(decoder_transformer_forward,
                                    H=H, q_len=q_len, scale=scale, n_layers=n_layers))
    out = jax.block_until_ready(fwd(x, params))

    # f32 reference; kernel uses bf16 matmul operands (f32 accumulation) and an
    # approx softmax reciprocal, so the tolerance is loosened accordingly.
    ref = ref_forward(x, params, H, q_len, scale, n_layers)
    np.testing.assert_allclose(np.asarray(out), np.asarray(ref), atol=2e-2, rtol=2e-2)

    # TODO(synk): nn.Dropout layers are inference-mode identities here (no RNG drop).
    print("KERNEL_OK")
</pallas_src>

<mosaic_0001>
module attributes {stable_mosaic.version = 11 : i64} {
  func.func @kernel(%arg0: memref<2x8x16xf32, #tpu.memory_space<vmem>>, %arg1: memref<2x16x96xbf16, #tpu.memory_space<vmem>>, %arg2: memref<1x96xf32, #tpu.memory_space<vmem>>, %arg3: memref<32x16xbf16, #tpu.memory_space<vmem>>, %arg4: memref<1x16xf32, #tpu.memory_space<vmem>>, %arg5: memref<1x16xf32, #tpu.memory_space<vmem>>, %arg6: memref<1x16xf32, #tpu.memory_space<vmem>>, %arg7: memref<16x64xbf16, #tpu.memory_space<vmem>>, %arg8: memref<1x64xf32, #tpu.memory_space<vmem>>, %arg9: memref<64x16xbf16, #tpu.memory_space<vmem>>, %arg10: memref<1x16xf32, #tpu.memory_space<vmem>>, %arg11: memref<1x16xf32, #tpu.memory_space<vmem>>, %arg12: memref<1x16xf32, #tpu.memory_space<vmem>>, %arg13: memref<16x8xf32, #tpu.memory_space<vmem>>, %arg14: memref<1x8xf32, #tpu.memory_space<vmem>>, %arg15: memref<2x8xf32, #tpu.memory_space<vmem>>, %arg16: memref<2x16x16xf32, #tpu.memory_space<vmem>>) attributes {dimension_semantics = [], scalar_prefetch = 0 : i64, scratch_operands = 1 : i64, tpu.core_type = #tpu.core_type<tc>} {
    %cst = arith.constant 0.000000e+00 : f32
    %0 = vector.broadcast %cst : f32 to vector<2x8x16xf32>
    %c0 = arith.constant 0 : index
    %c0_0 = arith.constant 0 : index
    %c0_1 = arith.constant 0 : index
    %1 = vector.load %arg16[%c0, %c0_0, %c0_1] : memref<2x16x16xf32, #tpu.memory_space<vmem>>, vector<2x8x16xf32>
    tpu.vector_store %arg16[%c0, %c0_0, %c0_1], %0 {strides = array<i32>} : memref<2x16x16xf32, #tpu.memory_space<vmem>>, vector<2x8x16xf32>,
    %c0_2 = arith.constant 0 : index
    %c0_3 = arith.constant 0 : index
    %c0_4 = arith.constant 0 : index
    %2 = vector.load %arg0[%c0_2, %c0_3, %c0_4] : memref<2x8x16xf32, #tpu.memory_space<vmem>>, vector<2x8x16xf32>
    %c0_5 = arith.constant 0 : index
    %c8 = arith.constant 8 : index
    %c0_6 = arith.constant 0 : index
    %3 = vector.load %arg16[%c0_5, %c8, %c0_6] : memref<2x16x16xf32, #tpu.memory_space<vmem>>, vector<2x8x16xf32>
    tpu.vector_store %arg16[%c0_5, %c8, %c0_6], %2 {strides = array<i32>} : memref<2x16x16xf32, #tpu.memory_space<vmem>>, vector<2x8x16xf32>,
    %c0_7 = arith.constant 0 : index
    %c0_8 = arith.constant 0 : index
    %c0_9 = arith.constant 0 : index
    %4 = vector.load %arg1[%c0_7, %c0_8, %c0_9] : memref<2x16x96xbf16, #tpu.memory_space<vmem>>, vector<1x16x96xbf16>
    %5 = vector.shape_cast %4 : vector<1x16x96xbf16> to vector<16x96xbf16>
    %c1 = arith.constant 1 : index
    %c0_10 = arith.constant 0 : index
    %c0_11 = arith.constant 0 : index
    %6 = vector.load %arg1[%c1, %c0_10, %c0_11] : memref<2x16x96xbf16, #tpu.memory_space<vmem>>, vector<1x16x96xbf16>
    %7 = vector.shape_cast %6 : vector<1x16x96xbf16> to vector<16x96xbf16>
    %c0_12 = arith.constant 0 : index
    %c0_13 = arith.constant 0 : index
    %8 = vector.load %arg3[%c0_12, %c0_13] : memref<32x16xbf16, #tpu.memory_space<vmem>>, vector<16x16xbf16>
    %c16 = arith.constant 16 : index
    %c0_14 = arith.constant 0 : index
    %9 = vector.load %arg3[%c16, %c0_14] : memref<32x16xbf16, #tpu.memory_space<vmem>>, vector<16x16xbf16>
    %c0_15 = arith.constant 0 : index
    %c0_16 = arith.constant 0 : index
    %10 = vector.load %arg7[%c0_15, %c0_16] : memref<16x64xbf16, #tpu.memory_space<vmem>>, vector<16x64xbf16>
    %c0_17 = arith.constant 0 : index
    %c0_18 = arith.constant 0 : index
    %11 = vector.load %arg9[%c0_17, %c0_18] : memref<64x16xbf16, #tpu.memory_space<vmem>>, vector<64x16xbf16>
    %c0_19 = arith.constant 0 : index
    %c0_20 = arith.constant 0 : index
    %12 = vector.load %arg2[%c0_19, %c0_20] : memref<1x96xf32, #tpu.memory_space<vmem>>, vector<1x96xf32>
    %13 = vector.shape_cast %12 : vector<1x96xf32> to vector<1x96xf32>
    %14 = vector.broadcast %13 : vector<1x96xf32> to vector<16x96xf32>
    %c0_21 = arith.constant 0 : index
    %c0_22 = arith.constant 0 : index
    %15 = vector.load %arg4[%c0_21, %c0_22] : memref<1x16xf32, #tpu.memory_space<vmem>>, vector<1x16xf32>
    %16 = vector.shape_cast %15 : vector<1x16xf32> to vector<1x16xf32>
    %17 = vector.broadcast %16 : vector<1x16xf32> to vector<16x16xf32>
    %c0_23 = arith.constant 0 : index
    %c0_24 = arith.constant 0 : index
    %18 = vector.load %arg8[%c0_23, %c0_24] : memref<1x64xf32, #tpu.memory_space<vmem>>, vector<1x64xf32>
    %19 = vector.shape_cast %18 : vector<1x64xf32> to vector<1x64xf32>
    %20 = vector.broadcast %19 : vector<1x64xf32> to vector<16x64xf32>
    %c0_25 = arith.constant 0 : index
    %c0_26 = arith.constant 0 : index
    %21 = vector.load %arg10[%c0_25, %c0_26] : memref<1x16xf32, #tpu.memory_space<vmem>>, vector<1x16xf32>
    %22 = vector.shape_cast %21 : vector<1x16xf32> to vector<1x16xf32>
    %23 = vector.broadcast %22 : vector<1x16xf32> to vector<16x16xf32>
    %c0_27 = arith.constant 0 : index
    %c0_28 = arith.constant 0 : index
    %24 = vector.load %arg5[%c0_27, %c0_28] : memref<1x16xf32, #tpu.memory_space<vmem>>, vector<1x16xf32>
    %25 = vector.shape_cast %24 : vector<1x16xf32> to vector<1x16xf32>
    %26 = vector.broadcast %25 : vector<1x16xf32> to vector<16x16xf32>
    %c0_29 = arith.constant 0 : index
    %c0_30 = arith.constant 0 : index
    %27 = vector.load %arg6[%c0_29, %c0_30] : memref<1x16xf32, #tpu.memory_space<vmem>>, vector<1x16xf32>
    %28 = vector.shape_cast %27 : vector<1x16xf32> to vector<1x16xf32>
    %29 = vector.broadcast %28 : vector<1x16xf32> to vector<16x16xf32>
    %c0_31 = arith.constant 0 : index
    %c0_32 = arith.constant 0 : index
    %30 = vector.load %arg11[%c0_31, %c0_32] : memref<1x16xf32, #tpu.memory_space<vmem>>, vector<1x16xf32>
    %31 = vector.shape_cast %30 : vector<1x16xf32> to vector<1x16xf32>
    %32 = vector.broadcast %31 : vector<1x16xf32> to vector<16x16xf32>
    %c0_33 = arith.constant 0 : index
    %c0_34 = arith.constant 0 : index
    %33 = vector.load %arg12[%c0_33, %c0_34] : memref<1x16xf32, #tpu.memory_space<vmem>>, vector<1x16xf32>
    %34 = vector.shape_cast %33 : vector<1x16xf32> to vector<1x16xf32>
    %35 = vector.broadcast %34 : vector<1x16xf32> to vector<16x16xf32>
    %36 = tpu.iota {dimensions = array<i32: 0>} : vector<8x8xi32>
    %37 = tpu.iota {dimensions = array<i32: 1>} : vector<8x8xi32>
    %38 = arith.cmpi sle, %37, %36 : vector<8x8xi32>
    %c0_i32 = arith.constant 0 : i32
    %c0_35 = arith.constant 0 : index
    %c8_36 = arith.constant 8 : index
    %c0_37 = arith.constant 0 : index
    %39 = vector.load %arg16[%c0_35, %c8_36, %c0_37] : memref<2x16x16xf32, #tpu.memory_space<vmem>>, vector<2x8x16xf32>
    %40 = vector.shape_cast %39 : vector<2x8x16xf32> to vector<16x16xf32>
    %41 = arith.truncf %40 : vector<16x16xf32> to vector<16x16xbf16>
    %cst_38 = arith.constant dense<0.000000e+00> : vector<16x96xf32>
    %42 = tpu.matmul %41, %7, %cst_38 {dimension_numbers = #tpu.dot_dimension_numbers<[1], [0], [0], [1], [0, 0, 1, 1], [], []>} : vector<16x16xbf16>, vector<16x96xbf16>, vector<16x96xf32> -> vector<16x96xf32>
    %c0_39 = arith.constant 0 : index
    %c7 = arith.constant 7 : index
    %c0_40 = arith.constant 0 : index
    %43 = vector.load %arg16[%c0_39, %c7, %c0_40] : memref<2x16x16xf32, #tpu.memory_space<vmem>>, vector<2x8x16xf32>
    %44 = vector.shape_cast %43 : vector<2x8x16xf32> to vector<16x16xf32>
    %45 = arith.truncf %44 : vector<16x16xf32> to vector<16x16xbf16>
    %cst_41 = arith.constant dense<0.000000e+00> : vector<16x96xf32>
    %46 = tpu.matmul %45, %5, %cst_41 {dimension_numbers = #tpu.dot_dimension_numbers<[1], [0], [0], [1], [0, 0, 1, 1], [], []>} : vector<16x16xbf16>, vector<16x96xbf16>, vector<16x96xf32> -> vector<16x96xf32>
    %47 = arith.addf %42, %46 : vector<16x96xf32>
    %48 = arith.addf %47, %14 : vector<16x96xf32>
    %49 = vector.extract_strided_slice %48 {offsets = [0, 0], sizes = [16, 16], strides = [1, 1]} : vector<16x96xf32> to vector<16x16xf32>
    %50 = vector.shape_cast %49 : vector<16x16xf32> to vector<2x8x16xf32>
    %51 = vector.extract_strided_slice %48 {offsets = [0, 16], sizes = [16, 16], strides = [1, 1]} : vector<16x96xf32> to vector<16x16xf32>
    %52 = vector.shape_cast %51 : vector<16x16xf32> to vector<2x8x16xf32>
    %53 = vector.shape_cast %50 : vector<2x8x16xf32> to vector<1x2x8x16xf32>
    %54 = vector.shape_cast %52 : vector<2x8x16xf32> to vector<1x2x8x16xf32>
    %55 = tpu.concatenate %53, %54 in 0 : vector<1x2x8x16xf32>, vector<1x2x8x16xf32> -> vector<2x2x8x16xf32>
    %56 = vector.shape_cast %55 : vector<2x2x8x16xf32> to vector<4x8x16xf32>
    %57 = arith.truncf %56 : vector<4x8x16xf32> to vector<4x8x16xbf16>
    %58 = vector.extract_strided_slice %48 {offsets = [0, 32], sizes = [16, 16], strides = [1, 1]} : vector<16x96xf32> to vector<16x16xf32>
    %59 = vector.shape_cast %58 : vector<16x16xf32> to vector<2x8x16xf32>
    %60 = vector.extract_strided_slice %48 {offsets = [0, 48], sizes = [16, 16], strides = [1, 1]} : vector<16x96xf32> to vector<16x16xf32>
    %61 = vector.shape_cast %60 : vector<16x16xf32> to vector<2x8x16xf32>
    %62 = vector.shape_cast %59 : vector<2x8x16xf32> to vector<1x2x8x16xf32>
    %63 = vector.shape_cast %61 : vector<2x8x16xf32> to vector<1x2x8x16xf32>
    %64 = tpu.concatenate %62, %63 in 0 : vector<1x2x8x16xf32>, vector<1x2x8x16xf32> -> vector<2x2x8x16xf32>
    %65 = vector.shape_cast %64 : vector<2x2x8x16xf32> to vector<4x8x16xf32>
    %66 = arith.truncf %65 : vector<4x8x16xf32> to vector<4x8x16xbf16>
    %67 = vector.extract_strided_slice %48 {offsets = [0, 64], sizes = [16, 16], strides = [1, 1]} : vector<16x96xf32> to vector<16x16xf32>
    %68 = vector.shape_cast %67 : vector<16x16xf32> to vector<2x8x16xf32>
    %69 = vector.extract_strided_slice %48 {offsets = [0, 80], sizes = [16, 16], strides = [1, 1]} : vector<16x96xf32> to vector<16x16xf32>
    %70 = vector.shape_cast %69 : vector<16x16xf32> to vector<2x8x16xf32>
    %71 = vector.shape_cast %68 : vector<2x8x16xf32> to vector<1x2x8x16xf32>
    %72 = vector.shape_cast %70 : vector<2x8x16xf32> to vector<1x2x8x16xf32>
    %73 = tpu.concatenate %71, %72 in 0 : vector<1x2x8x16xf32>, vector<1x2x8x16xf32> -> vector<2x2x8x16xf32>
    %74 = vector.shape_cast %73 : vector<2x2x8x16xf32> to vector<4x8x16xf32>
    %75 = arith.truncf %74 : vector<4x8x16xf32> to vector<4x8x16xbf16>
    "tpu.trace_start"() <{level = 10 : i32, message = "bld,bmd->blm"}> : () -> ()
    %cst_42 = arith.constant dense<0.000000e+00> : vector<4x8x8xf32>
    %76 = tpu.matmul %57, %66, %cst_42 {dimension_numbers = #tpu.dot_dimension_numbers<[2], [2], [1], [1], [0, 0, 0, 1, 1, 1], [0], [0]>} : vector<4x8x16xbf16>, vector<4x8x16xbf16>, vector<4x8x8xf32> -> vector<4x8x8xf32>
    %cst_43 = arith.constant -1.000000e+09 : f32
    "tpu.trace_stop"() : () -> ()
    %77 = vector.shape_cast %38 : vector<8x8xi1> to vector<1x8x8xi1>
    %78 = vector.broadcast %77 : vector<1x8x8xi1> to vector<4x8x8xi1>
    %79 = vector.broadcast %cst_43 : f32 to vector<4x8x8xf32>
    %80 = arith.select %78, %76, %79 : vector<4x8x8xi1>, vector<4x8x8xf32>
    %cst_44 = arith.constant dense<0xFF800000> : vector<4x8xf32>
    %81 = vector.multi_reduction <maximumf>, %80, %cst_44 [2] : vector<4x8x8xf32> to vector<4x8xf32>
    %82 = vector.shape_cast %81 : vector<4x8xf32> to vector<4x8x1xf32>
    %83 = vector.broadcast %82 : vector<4x8x1xf32> to vector<4x8x8xf32>
    %84 = arith.subf %80, %83 : vector<4x8x8xf32>
    %85 = math.exp %84 : vector<4x8x8xf32>
    %cst_45 = arith.constant dense<0.000000e+00> : vector<4x8xf32>
    %86 = vector.multi_reduction <add>, %85, %cst_45 [2] : vector<4x8x8xf32> to vector<4x8xf32>
    %87 = vector.shape_cast %86 : vector<4x8xf32> to vector<4x8x1xf32>
    %88 = tpu.reciprocal %87 {approx = true} : vector<4x8x1xf32> -> vector<4x8x1xf32>
    %89 = vector.broadcast %88 : vector<4x8x1xf32> to vector<4x8x8xf32>
    %90 = arith.mulf %85, %89 : vector<4x8x8xf32>
    %91 = arith.truncf %90 : vector<4x8x8xf32> to vector<4x8x8xbf16>
    "tpu.trace_start"() <{level = 10 : i32, message = "blm,bmd->bld"}> : () -> ()
    %cst_46 = arith.constant dense<0.000000e+00> : vector<4x8x16xf32>
    %92 = tpu.matmul %91, %75, %cst_46 {dimension_numbers = #tpu.dot_dimension_numbers<[2], [1], [1], [2], [0, 0, 0, 1, 1, 2], [0], [0]>} : vector<4x8x8xbf16>, vector<4x8x16xbf16>, vector<4x8x16xf32> -> vector<4x8x16xf32>
    "tpu.trace_stop"() : () -> ()
    %93 = vector.shape_cast %92 : vector<4x8x16xf32> to vector<2x16x16xf32>
    %94 = vector.extract_strided_slice %93 {offsets = [0, 0, 0], sizes = [1, 16, 16], strides = [1, 1, 1]} : vector<2x16x16xf32> to vector<1x16x16xf32>
    %95 = vector.shape_cast %94 : vector<1x16x16xf32> to vector<16x16xf32>
    %96 = arith.truncf %95 : vector<16x16xf32> to vector<16x16xbf16>
    %cst_47 = arith.constant dense<0.000000e+00> : vector<16x16xf32>
    %97 = tpu.matmul %96, %8, %cst_47 {dimension_numbers = #tpu.dot_dimension_numbers<[1], [0], [0], [1], [0, 0, 1, 1], [], []>} : vector<16x16xbf16>, vector<16x16xbf16>, vector<16x16xf32> -> vector<16x16xf32>
    %98 = arith.addf %17, %97 : vector<16x16xf32>
    %99 = vector.extract_strided_slice %93 {offsets = [1, 0, 0], sizes = [1, 16, 16], strides = [1, 1, 1]} : vector<2x16x16xf32> to vector<1x16x16xf32>
    %100 = vector.shape_cast %99 : vector<1x16x16xf32> to vector<16x16xf32>
    %101 = arith.truncf %100 : vector<16x16xf32> to vector<16x16xbf16>
    %cst_48 = arith.constant dense<0.000000e+00> : vector<16x16xf32>
    %102 = tpu.matmul %101, %9, %cst_48 {dimension_numbers = #tpu.dot_dimension_numbers<[1], [0], [0], [1], [0, 0, 1, 1], [], []>} : vector<16x16xbf16>, vector<16x16xbf16>, vector<16x16xf32> -> vector<16x16xf32>
    %103 = arith.addf %98, %102 : vector<16x16xf32>
    %104 = arith.addf %40, %103 : vector<16x16xf32>
    %cst_49 = arith.constant dense<0.000000e+00> : vector<16xf32>
    %105 = vector.multi_reduction <add>, %104, %cst_49 [1] : vector<16x16xf32> to vector<16xf32>
    %106 = vector.shape_cast %105 : vector<16xf32> to vector<16x1xf32>
    %cst_50 = arith.constant 1.600000e+01 : f32
    %107 = vector.broadcast %cst_50 : f32 to vector<16x1xf32>
    %108 = arith.divf %106, %107 : vector<16x1xf32>
    %109 = vector.broadcast %108 : vector<16x1xf32> to vector<16x16xf32>
    %110 = arith.subf %104, %109 : vector<16x16xf32>
    %111 = arith.mulf %110, %110 : vector<16x16xf32>
    %cst_51 = arith.constant dense<0.000000e+00> : vector<16xf32>
    %112 = vector.multi_reduction <add>, %111, %cst_51 [1] : vector<16x16xf32> to vector<16xf32>
    %113 = vector.shape_cast %112 : vector<16xf32> to vector<16x1xf32>
    %cst_52 = arith.constant 1.600000e+01 : f32
    %114 = vector.broadcast %cst_52 : f32 to vector<16x1xf32>
    %115 = arith.divf %113, %114 : vector<16x1xf32>
    %116 = vector.broadcast %108 : vector<16x1xf32> to vector<16x16xf32>
    %117 = arith.subf %104, %116 : vector<16x16xf32>
    %cst_53 = arith.constant 9.99999974E-6 : f32
    %118 = vector.broadcast %cst_53 : f32 to vector<16x1xf32>
    %119 = arith.addf %115, %118 : vector<16x1xf32>
    %120 = math.rsqrt %119 : vector<16x1xf32>
    %121 = vector.broadcast %120 : vector<16x1xf32> to vector<16x16xf32>
    %122 = arith.mulf %117, %121 : vector<16x16xf32>
    %123 = arith.mulf %122, %26 : vector<16x16xf32>
    %124 = arith.addf %123, %29 : vector<16x16xf32>
    %125 = arith.truncf %124 : vector<16x16xf32> to vector<16x16xbf16>
    %cst_54 = arith.constant dense<0.000000e+00> : vector<16x64xf32>
    %126 = tpu.matmul %125, %10, %cst_54 {dimension_numbers = #tpu.dot_dimension_numbers<[1], [0], [0], [1], [0, 0, 1, 1], [], []>} : vector<16x16xbf16>, vector<16x64xbf16>, vector<16x64xf32> -> vector<16x64xf32>
    %127 = arith.addf %126, %20 : vector<16x64xf32>
    %cst_55 = arith.constant 0.000000e+00 : f32
    %128 = vector.broadcast %cst_55 : f32 to vector<16x64xf32>
    %129 = arith.maximumf %127, %128 : vector<16x64xf32>
    %130 = arith.truncf %129 : vector<16x64xf32> to vector<16x64xbf16>
    %cst_56 = arith.constant dense<0.000000e+00> : vector<16x16xf32>
    %131 = tpu.matmul %130, %11, %cst_56 {dimension_numbers = #tpu.dot_dimension_numbers<[1], [0], [0], [1], [0, 0, 1, 1], [], []>} : vector<16x64xbf16>, vector<64x16xbf16>, vector<16x16xf32> -> vector<16x16xf32>
    %132 = arith.addf %131, %23 : vector<16x16xf32>
    %133 = arith.addf %124, %132 : vector<16x16xf32>
    %cst_57 = arith.constant dense<0.000000e+00> : vector<16xf32>
    %134 = vector.multi_reduction <add>, %133, %cst_57 [1] : vector<16x16xf32> to vector<16xf32>
    %135 = vector.shape_cast %134 : vector<16xf32> to vector<16x1xf32>
    %cst_58 = arith.constant 1.600000e+01 : f32
    %136 = vector.broadcast %cst_58 : f32 to vector<16x1xf32>
    %137 = arith.divf %135, %136 : vector<16x1xf32>
    %138 = vector.broadcast %137 : vector<16x1xf32> to vector<16x16xf32>
    %139 = arith.subf %133, %138 : vector<16x16xf32>
    %140 = arith.mulf %139, %139 : vector<16x16xf32>
    %cst_59 = arith.constant dense<0.000000e+00> : vector<16xf32>
    %141 = vector.multi_reduction <add>, %140, %cst_59 [1] : vector<16x16xf32> to vector<16xf32>
    %142 = vector.shape_cast %141 : vector<16xf32> to vector<16x1xf32>
    %cst_60 = arith.constant 1.600000e+01 : f32
    %143 = vector.broadcast %cst_60 : f32 to vector<16x1xf32>
    %144 = arith.divf %142, %143 : vector<16x1xf32>
    %145 = vector.broadcast %137 : vector<16x1xf32> to vector<16x16xf32>
    %146 = arith.subf %133, %145 : vector<16x16xf32>
    %cst_61 = arith.constant 9.99999974E-6 : f32
    %147 = vector.broadcast %cst_61 : f32 to vector<16x1xf32>
    %148 = arith.addf %144, %147 : vector<16x1xf32>
    %149 = math.rsqrt %148 : vector<16x1xf32>
    %150 = vector.broadcast %149 : vector<16x1xf32> to vector<16x16xf32>
    %151 = arith.mulf %146, %150 : vector<16x16xf32>
    %152 = arith.mulf %151, %32 : vector<16x16xf32>
    %153 = arith.addf %152, %35 : vector<16x16xf32>
    %154 = vector.shape_cast %153 : vector<16x16xf32> to vector<2x8x16xf32>
    %c0_62 = arith.constant 0 : index
    %c8_63 = arith.constant 8 : index
    %c0_64 = arith.constant 0 : index
    %155 = vector.load %arg16[%c0_62, %c8_63, %c0_64] : memref<2x16x16xf32, #tpu.memory_space<vmem>>, vector<2x8x16xf32>
    tpu.vector_store %arg16[%c0_62, %c8_63, %c0_64], %154 {strides = array<i32>} : memref<2x16x16xf32, #tpu.memory_space<vmem>>, vector<2x8x16xf32>,
    %c1_i32 = arith.constant 1 : i32
    %c0_65 = arith.constant 0 : index
    %c8_66 = arith.constant 8 : index
    %c0_67 = arith.constant 0 : index
    %156 = vector.load %arg16[%c0_65, %c8_66, %c0_67] : memref<2x16x16xf32, #tpu.memory_space<vmem>>, vector<2x8x16xf32>
    %157 = vector.shape_cast %156 : vector<2x8x16xf32> to vector<16x16xf32>
    %158 = arith.truncf %157 : vector<16x16xf32> to vector<16x16xbf16>
    %cst_68 = arith.constant dense<0.000000e+00> : vector<16x96xf32>
    %159 = tpu.matmul %158, %7, %cst_68 {dimension_numbers = #tpu.dot_dimension_numbers<[1], [0], [0], [1], [0, 0, 1, 1], [], []>} : vector<16x16xbf16>, vector<16x96xbf16>, vector<16x96xf32> -> vector<16x96xf32>
    %c0_69 = arith.constant 0 : index
    %c7_70 = arith.constant 7 : index
    %c0_71 = arith.constant 0 : index
    %160 = vector.load %arg16[%c0_69, %c7_70, %c0_71] : memref<2x16x16xf32, #tpu.memory_space<vmem>>, vector<2x8x16xf32>
    %161 = vector.shape_cast %160 : vector<2x8x16xf32> to vector<16x16xf32>
    %162 = arith.truncf %161 : vector<16x16xf32> to vector<16x16xbf16>
    %cst_72 = arith.constant dense<0.000000e+00> : vector<16x96xf32>
    %163 = tpu.matmul %162, %5, %cst_72 {dimension_numbers = #tpu.dot_dimension_numbers<[1], [0], [0], [1], [0, 0, 1, 1], [], []>} : vector<16x16xbf16>, vector<16x96xbf16>, vector<16x96xf32> -> vector<16x96xf32>
    %164 = arith.addf %159, %163 : vector<16x96xf32>
    %165 = arith.addf %164, %14 : vector<16x96xf32>
    %166 = vector.extract_strided_slice %165 {offsets = [0, 0], sizes = [16, 16], strides = [1, 1]} : vector<16x96xf32> to vector<16x16xf32>
    %167 = vector.shape_cast %166 : vector<16x16xf32> to vector<2x8x16xf32>
    %168 = vector.extract_strided_slice %165 {offsets = [0, 16], sizes = [16, 16], strides = [1, 1]} : vector<16x96xf32> to vector<16x16xf32>
    %169 = vector.shape_cast %168 : vector<16x16xf32> to vector<2x8x16xf32>
    %170 = vector.shape_cast %167 : vector<2x8x16xf32> to vector<1x2x8x16xf32>
    %171 = vector.shape_cast %169 : vector<2x8x16xf32> to vector<1x2x8x16xf32>
    %172 = tpu.concatenate %170, %171 in 0 : vector<1x2x8x16xf32>, vector<1x2x8x16xf32> -> vector<2x2x8x16xf32>
    %173 = vector.shape_cast %172 : vector<2x2x8x16xf32> to vector<4x8x16xf32>
    %174 = arith.truncf %173 : vector<4x8x16xf32> to vector<4x8x16xbf16>
    %175 = vector.extract_strided_slice %165 {offsets = [0, 32], sizes = [16, 16], strides = [1, 1]} : vector<16x96xf32> to vector<16x16xf32>
    %176 = vector.shape_cast %175 : vector<16x16xf32> to vector<2x8x16xf32>
    %177 = vector.extract_strided_slice %165 {offsets = [0, 48], sizes = [16, 16], strides = [1, 1]} : vector<16x96xf32> to vector<16x16xf32>
    %178 = vector.shape_cast %177 : vector<16x16xf32> to vector<2x8x16xf32>
    %179 = vector.shape_cast %176 : vector<2x8x16xf32> to vector<1x2x8x16xf32>
    %180 = vector.shape_cast %178 : vector<2x8x16xf32> to vector<1x2x8x16xf32>
    %181 = tpu.concatenate %179, %180 in 0 : vector<1x2x8x16xf32>, vector<1x2x8x16xf32> -> vector<2x2x8x16xf32>
    %182 = vector.shape_cast %181 : vector<2x2x8x16xf32> to vector<4x8x16xf32>
    %183 = arith.truncf %182 : vector<4x8x16xf32> to vector<4x8x16xbf16>
    %184 = vector.extract_strided_slice %165 {offsets = [0, 64], sizes = [16, 16], strides = [1, 1]} : vector<16x96xf32> to vector<16x16xf32>
    %185 = vector.shape_cast %184 : vector<16x16xf32> to vector<2x8x16xf32>
    %186 = vector.extract_strided_slice %165 {offsets = [0, 80], sizes = [16, 16], strides = [1, 1]} : vector<16x96xf32> to vector<16x16xf32>
    %187 = vector.shape_cast %186 : vector<16x16xf32> to vector<2x8x16xf32>
    %188 = vector.shape_cast %185 : vector<2x8x16xf32> to vector<1x2x8x16xf32>
    %189 = vector.shape_cast %187 : vector<2x8x16xf32> to vector<1x2x8x16xf32>
    %190 = tpu.concatenate %188, %189 in 0 : vector<1x2x8x16xf32>, vector<1x2x8x16xf32> -> vector<2x2x8x16xf32>
    %191 = vector.shape_cast %190 : vector<2x2x8x16xf32> to vector<4x8x16xf32>
    %192 = arith.truncf %191 : vector<4x8x16xf32> to vector<4x8x16xbf16>
    "tpu.trace_start"() <{level = 10 : i32, message = "bld,bmd->blm"}> : () -> ()
    %cst_73 = arith.constant dense<0.000000e+00> : vector<4x8x8xf32>
    %193 = tpu.matmul %174, %183, %cst_73 {dimension_numbers = #tpu.dot_dimension_numbers<[2], [2], [1], [1], [0, 0, 0, 1, 1, 1], [0], [0]>} : vector<4x8x16xbf16>, vector<4x8x16xbf16>, vector<4x8x8xf32> -> vector<4x8x8xf32>
    %cst_74 = arith.constant -1.000000e+09 : f32
    "tpu.trace_stop"() : () -> ()
    %194 = vector.shape_cast %38 : vector<8x8xi1> to vector<1x8x8xi1>
    %195 = vector.broadcast %194 : vector<1x8x8xi1> to vector<4x8x8xi1>
    %196 = vector.broadcast %cst_74 : f32 to vector<4x8x8xf32>
    %197 = arith.select %195, %193, %196 : vector<4x8x8xi1>, vector<4x8x8xf32>
    %cst_75 = arith.constant dense<0xFF800000> : vector<4x8xf32>
    %198 = vector.multi_reduction <maximumf>, %197, %cst_75 [2] : vector<4x8x8xf32> to vector<4x8xf32>
    %199 = vector.shape_cast %198 : vector<4x8xf32> to vector<4x8x1xf32>
    %200 = vector.broadcast %199 : vector<4x8x1xf32> to vector<4x8x8xf32>
    %201 = arith.subf %197, %200 : vector<4x8x8xf32>
    %202 = math.exp %201 : vector<4x8x8xf32>
    %cst_76 = arith.constant dense<0.000000e+00> : vector<4x8xf32>
    %203 = vector.multi_reduction <add>, %202, %cst_76 [2] : vector<4x8x8xf32> to vector<4x8xf32>
    %204 = vector.shape_cast %203 : vector<4x8xf32> to vector<4x8x1xf32>
    %205 = tpu.reciprocal %204 {approx = true} : vector<4x8x1xf32> -> vector<4x8x1xf32>
    %206 = vector.broadcast %205 : vector<4x8x1xf32> to vector<4x8x8xf32>
    %207 = arith.mulf %202, %206 : vector<4x8x8xf32>
    %208 = arith.truncf %207 : vector<4x8x8xf32> to vector<4x8x8xbf16>
    "tpu.trace_start"() <{level = 10 : i32, message = "blm,bmd->bld"}> : () -> ()
    %cst_77 = arith.constant dense<0.000000e+00> : vector<4x8x16xf32>
    %209 = tpu.matmul %208, %192, %cst_77 {dimension_numbers = #tpu.dot_dimension_numbers<[2], [1], [1], [2], [0, 0, 0, 1, 1, 2], [0], [0]>} : vector<4x8x8xbf16>, vector<4x8x16xbf16>, vector<4x8x16xf32> -> vector<4x8x16xf32>
    "tpu.trace_stop"() : () -> ()
    %210 = vector.shape_cast %209 : vector<4x8x16xf32> to vector<2x16x16xf32>
    %211 = vector.extract_strided_slice %210 {offsets = [0, 0, 0], sizes = [1, 16, 16], strides = [1, 1, 1]} : vector<2x16x16xf32> to vector<1x16x16xf32>
    %212 = vector.shape_cast %211 : vector<1x16x16xf32> to vector<16x16xf32>
    %213 = arith.truncf %212 : vector<16x16xf32> to vector<16x16xbf16>
    %cst_78 = arith.constant dense<0.000000e+00> : vector<16x16xf32>
    %214 = tpu.matmul %213, %8, %cst_78 {dimension_numbers = #tpu.dot_dimension_numbers<[1], [0], [0], [1], [0, 0, 1, 1], [], []>} : vector<16x16xbf16>, vector<16x16xbf16>, vector<16x16xf32> -> vector<16x16xf32>
    %215 = arith.addf %17, %214 : vector<16x16xf32>
    %216 = vector.extract_strided_slice %210 {offsets = [1, 0, 0], sizes = [1, 16, 16], strides = [1, 1, 1]} : vector<2x16x16xf32> to vector<1x16x16xf32>
    %217 = vector.shape_cast %216 : vector<1x16x16xf32> to vector<16x16xf32>
    %218 = arith.truncf %217 : vector<16x16xf32> to vector<16x16xbf16>
    %cst_79 = arith.constant dense<0.000000e+00> : vector<16x16xf32>
    %219 = tpu.matmul %218, %9, %cst_79 {dimension_numbers = #tpu.dot_dimension_numbers<[1], [0], [0], [1], [0, 0, 1, 1], [], []>} : vector<16x16xbf16>, vector<16x16xbf16>, vector<16x16xf32> -> vector<16x16xf32>
    %220 = arith.addf %215, %219 : vector<16x16xf32>
    %221 = arith.addf %157, %220 : vector<16x16xf32>
    %cst_80 = arith.constant dense<0.000000e+00> : vector<16xf32>
    %222 = vector.multi_reduction <add>, %221, %cst_80 [1] : vector<16x16xf32> to vector<16xf32>
    %223 = vector.shape_cast %222 : vector<16xf32> to vector<16x1xf32>
    %cst_81 = arith.constant 1.600000e+01 : f32
    %224 = vector.broadcast %cst_81 : f32 to vector<16x1xf32>
    %225 = arith.divf %223, %224 : vector<16x1xf32>
    %226 = vector.broadcast %225 : vector<16x1xf32> to vector<16x16xf32>
    %227 = arith.subf %221, %226 : vector<16x16xf32>
    %228 = arith.mulf %227, %227 : vector<16x16xf32>
    %cst_82 = arith.constant dense<0.000000e+00> : vector<16xf32>
    %229 = vector.multi_reduction <add>, %228, %cst_82 [1] : vector<16x16xf32> to vector<16xf32>
    %230 = vector.shape_cast %229 : vector<16xf32> to vector<16x1xf32>
    %cst_83 = arith.constant 1.600000e+01 : f32
    %231 = vector.broadcast %cst_83 : f32 to vector<16x1xf32>
    %232 = arith.divf %230, %231 : vector<16x1xf32>
    %233 = vector.broadcast %225 : vector<16x1xf32> to vector<16x16xf32>
    %234 = arith.subf %221, %233 : vector<16x16xf32>
    %cst_84 = arith.constant 9.99999974E-6 : f32
    %235 = vector.broadcast %cst_84 : f32 to vector<16x1xf32>
    %236 = arith.addf %232, %235 : vector<16x1xf32>
    %237 = math.rsqrt %236 : vector<16x1xf32>
    %238 = vector.broadcast %237 : vector<16x1xf32> to vector<16x16xf32>
    %239 = arith.mulf %234, %238 : vector<16x16xf32>
    %240 = arith.mulf %239, %26 : vector<16x16xf32>
    %241 = arith.addf %240, %29 : vector<16x16xf32>
    %242 = arith.truncf %241 : vector<16x16xf32> to vector<16x16xbf16>
    %cst_85 = arith.constant dense<0.000000e+00> : vector<16x64xf32>
    %243 = tpu.matmul %242, %10, %cst_85 {dimension_numbers = #tpu.dot_dimension_numbers<[1], [0], [0], [1], [0, 0, 1, 1], [], []>} : vector<16x16xbf16>, vector<16x64xbf16>, vector<16x64xf32> -> vector<16x64xf32>
    %244 = arith.addf %243, %20 : vector<16x64xf32>
    %cst_86 = arith.constant 0.000000e+00 : f32
    %245 = vector.broadcast %cst_86 : f32 to vector<16x64xf32>
    %246 = arith.maximumf %244, %245 : vector<16x64xf32>
    %247 = arith.truncf %246 : vector<16x64xf32> to vector<16x64xbf16>
    %cst_87 = arith.constant dense<0.000000e+00> : vector<16x16xf32>
    %248 = tpu.matmul %247, %11, %cst_87 {dimension_numbers = #tpu.dot_dimension_numbers<[1], [0], [0], [1], [0, 0, 1, 1], [], []>} : vector<16x64xbf16>, vector<64x16xbf16>, vector<16x16xf32> -> vector<16x16xf32>
    %249 = arith.addf %248, %23 : vector<16x16xf32>
    %250 = arith.addf %241, %249 : vector<16x16xf32>
    %cst_88 = arith.constant dense<0.000000e+00> : vector<16xf32>
    %251 = vector.multi_reduction <add>, %250, %cst_88 [1] : vector<16x16xf32> to vector<16xf32>
    %252 = vector.shape_cast %251 : vector<16xf32> to vector<16x1xf32>
    %cst_89 = arith.constant 1.600000e+01 : f32
    %253 = vector.broadcast %cst_89 : f32 to vector<16x1xf32>
    %254 = arith.divf %252, %253 : vector<16x1xf32>
    %255 = vector.broadcast %254 : vector<16x1xf32> to vector<16x16xf32>
    %256 = arith.subf %250, %255 : vector<16x16xf32>
    %257 = arith.mulf %256, %256 : vector<16x16xf32>
    %cst_90 = arith.constant dense<0.000000e+00> : vector<16xf32>
    %258 = vector.multi_reduction <add>, %257, %cst_90 [1] : vector<16x16xf32> to vector<16xf32>
    %259 = vector.shape_cast %258 : vector<16xf32> to vector<16x1xf32>
    %cst_91 = arith.constant 1.600000e+01 : f32
    %260 = vector.broadcast %cst_91 : f32 to vector<16x1xf32>
    %261 = arith.divf %259, %260 : vector<16x1xf32>
    %262 = vector.broadcast %254 : vector<16x1xf32> to vector<16x16xf32>
    %263 = arith.subf %250, %262 : vector<16x16xf32>
    %cst_92 = arith.constant 9.99999974E-6 : f32
    %264 = vector.broadcast %cst_92 : f32 to vector<16x1xf32>
    %265 = arith.addf %261, %264 : vector<16x1xf32>
    %266 = math.rsqrt %265 : vector<16x1xf32>
    %267 = vector.broadcast %266 : vector<16x1xf32> to vector<16x16xf32>
    %268 = arith.mulf %263, %267 : vector<16x16xf32>
    %269 = arith.mulf %268, %32 : vector<16x16xf32>
    %270 = arith.addf %269, %35 : vector<16x16xf32>
    %271 = vector.shape_cast %270 : vector<16x16xf32> to vector<2x8x16xf32>
    %c0_93 = arith.constant 0 : index
    %c8_94 = arith.constant 8 : index
    %c0_95 = arith.constant 0 : index
    %272 = vector.load %arg16[%c0_93, %c8_94, %c0_95] : memref<2x16x16xf32, #tpu.memory_space<vmem>>, vector<2x8x16xf32>
    tpu.vector_store %arg16[%c0_93, %c8_94, %c0_95], %271 {strides = array<i32>} : memref<2x16x16xf32, #tpu.memory_space<vmem>>, vector<2x8x16xf32>,
    %c0_96 = arith.constant 0 : index
    %c8_97 = arith.constant 8 : index
    %c0_98 = arith.constant 0 : index
    %273 = vector.load %arg16[%c0_96, %c8_97, %c0_98] : memref<2x16x16xf32, #tpu.memory_space<vmem>>, vector<2x8x16xf32>
    %cst_99 = arith.constant dense<0.000000e+00> : vector<2x16xf32>
    %274 = vector.multi_reduction <add>, %273, %cst_99 [1] : vector<2x8x16xf32> to vector<2x16xf32>
    %cst_100 = arith.constant 8.000000e+00 : f32
    %275 = vector.broadcast %cst_100 : f32 to vector<2x16xf32>
    %276 = arith.divf %274, %275 : vector<2x16xf32>
    %c0_101 = arith.constant 0 : index
    %c0_102 = arith.constant 0 : index
    %277 = vector.load %arg13[%c0_101, %c0_102] : memref<16x8xf32, #tpu.memory_space<vmem>>, vector<16x8xf32>
    %cst_103 = arith.constant dense<0.000000e+00> : vector<2x8xf32>
    %278 = tpu.matmul %276, %277, %cst_103 {dimension_numbers = #tpu.dot_dimension_numbers<[1], [0], [0], [1], [0, 0, 1, 1], [], []>} : vector<2x16xf32>, vector<16x8xf32>, vector<2x8xf32> -> vector<2x8xf32>
    %c0_104 = arith.constant 0 : index
    %c0_105 = arith.constant 0 : index
    %279 = vector.load %arg14[%c0_104, %c0_105] : memref<1x8xf32, #tpu.memory_space<vmem>>, vector<1x8xf32>
    %280 = vector.broadcast %279 : vector<1x8xf32> to vector<2x8xf32>
    %281 = arith.addf %278, %280 : vector<2x8xf32>
    %c0_106 = arith.constant 0 : index
    %c0_107 = arith.constant 0 : index
    %282 = vector.load %arg15[%c0_106, %c0_107] : memref<2x8xf32, #tpu.memory_space<vmem>>, vector<2x8xf32>
    tpu.vector_store %arg15[%c0_106, %c0_107], %281 {strides = array<i32>} : memref<2x8xf32, #tpu.memory_space<vmem>>, vector<2x8xf32>,
    return
  }
}

</mosaic_0001>

<bundles_post_ra>
// kernel: decoder_transformer_forward.1
= control target key start
LH: loop header
LB: loop body
LE: loop exit
PB: predicated region body
PF: predicated region fallthrough
CT: control target
= control target key end

     0   :  { %v2315_v1 = vmov 0.0   ;;  %vm52_vm0 = vcmask 130048   ;;  %vm2316_vm1 = vmmov 0   ;;  %s2826_s0 = inlined_call_operand.vmem [shape: f32[2,8,16], index: 0, kind: input, shape index: {}]   ;;  %s2827_s1 = inlined_call_operand.vmem [shape: bf16[2,16,96], index: 1, kind: input, shape index: {}]   ;;  %s2828_s2 = inlined_call_operand.vmem [shape: f32[1,96], index: 2, kind: input, shape index: {}]   ;;  %s2829_s3 = inlined_call_operand.vmem [shape: bf16[32,16], index: 3, kind: input, shape index: {}]   ;;  %s2830_s4 = inlined_call_operand.vmem [shape: f32[1,16], index: 4, kind: input, shape index: {}]   ;;  %s2831_s5 = inlined_call_operand.vmem [shape: f32[1,16], index: 5, kind: input, shape index: {}]   ;;  %s2832_s6 = inlined_call_operand.vmem [shape: f32[1,16], index: 6, kind: input, shape index: {}]   ;;  %s2833_s7 = inlined_call_operand.vmem [shape: bf16[16,64], index: 7, kind: input, shape index: {}]   ;;  %s2834_s8 = inlined_call_operand.vmem [shape: f32[1,64], index: 8, kind: input, shape index: {}]   ;;  %s2835_s9 = inlined_call_operand.vmem [shape: bf16[64,16], index: 9, kind: input, shape index: {}]   ;;  %s2836_s10 = inlined_call_operand.vmem [shape: f32[1,16], index: 10, kind: input, shape index: {}]   ;;  %s2837_s11 = inlined_call_operand.vmem [shape: f32[1,16], index: 11, kind: input, shape index: {}]   ;;  %s2838_s12 = inlined_call_operand.vmem [shape: f32[1,16], index: 12, kind: input, shape index: {}]   ;;  %s2839_s13 = inlined_call_operand.vmem [shape: f32[16,8], index: 13, kind: input, shape index: {}]   ;;  %s2840_s14 = inlined_call_operand.vmem [shape: f32[1,8], index: 14, kind: input, shape index: {}]   ;;  %s2841_s15 = inlined_call_operand.hbm [shape: f32[2,8], index: 15, kind: output, shape index: {}]  }
   0x1   :  { %v2404_v0 = vld [vmem:[%s2827_s1] sm:$0xff]   ;;  %2033 = vmatprep.subr.bf16.mxu1 %v2315_v1  ;;  %v56_v3 = vld [vmem:[%s2826_s0 + $0x8] sm:$0xff]  ;;  %2045 = vmatprep.subr.bf16.mxu0 %v2315_v1  ;;  %53 = vst.msk [vmem:[#allocation2] sm:$0xff] %vm52_vm0, %v2315_v1  ;;  %54 = vst.msk [vmem:[#allocation2 + $0x10] sm:$0xff] %vm52_vm0, %v2315_v1 }
   0x2   :  { %v55_v2 = vld [vmem:[%s2826_s0] sm:$0xff]  ;;  %2034 = vmatpush3.bf16.msra.mxu1 %v2404_v0  ;;  %2035 = vmatprep.mubr.msk.bf16.mxu1 %vm2316_vm1, %v2315_v1  ;;  %58 = vst.msk [vmem:[#allocation2 + $0x18] sm:$0xff] %vm52_vm0, %v56_v3 }
   0x3   :  { %57 = vst.msk [vmem:[#allocation2 + $0x8] sm:$0xff] %vm52_vm0, %v55_v2  ;;  %2039 = vmatprep.subr.bf16.mxu1 %v2315_v1  ;;  %2047 = vmatprep.mubr.msk.bf16.mxu0 %vm2316_vm1, %v2315_v1 }
   0x4   :  { %20 = vsyncpa [#allocation4], 0  ;;  %v2429_v6 = vld [vmem:[%s2827_s1 + $0x8] sm:$0xff]   ;;  %v2448_v18 = vld [vmem:[%s2828_s2] ss:$0 sm:$0xff]  ;;  %s2317_s26 = smov 112   ;;  %v134_v40 = vlaneseq }
   0x5   :  { %s2318_s27 = smov 96   ;;  %vm461_vm3 = vcmask 64512   ;;  %s2319_s2 = smov 64   ;;  %vm515_vm4 = vcmask 1043456   ;;  %vm920_vm5 = vcmask 523264   ;;  %vm1829_vm6 = vcmask 1041409  }
   0x6   :  { %v135_v41 = vshrl.u32 %v134_v40, 7  ;;  %v137_v42 = vand.u32 127, %v134_v40  ;;  %s2320_s17 = smov [#allocation3]   ;;  %vm1903_vm7 = vcmask 58368  }
   0x8   :  { %vm2493_vm2 = vcmp.le.s32.totalorder %v137_v42, %v135_v41 }
   0x9   :  { %v143_v5 = vld [vmem:[#allocation2 + $0x17] sm:$0xff] }
   0xa   :  { %v142_v4 = vld [vmem:[#allocation2 + $0x7] sm:$0xff]  ;;  %v2437_v9 = vld [vmem:[#allocation2 + $0x18] sm:$0xff] }
   0xb   :  { %v144_v7 = vpack.c.bf16 %v143_v5, %v142_v4  ;;  %v2435_v8 = vld [vmem:[#allocation2 + $0x8] sm:$0xff] }
   0xc   :  { %v141_v10 = vpack.c.bf16 %v2437_v9, %v2435_v8 }
   0xd   :  { %2036 = vmatmul.mubr.msk.bf16.vlgmr.msra.gmra.mxu1 %vm52_vm0, %v144_v7 }
   0xe   :  { %2040 = vmatpush3.bf16.msra.mxu1 %v2429_v6  ;;  %2041 = vmatprep.mubr.msk.bf16.mxu1 %vm2316_vm1, %v2315_v1 }
   0xf   :  { %2051 = vmatprep.subr.bf16.mxu1 %v2315_v1 }
  0x15   :  { %2042 = vmatmul.mubr.msk.bf16.vlgmr.msra.gmra.mxu1 %vm52_vm0, %v141_v10 }
  0x16   :  { %2053 = vmatprep.mubr.msk.bf16.mxu1 %vm2316_vm1, %v2315_v1 }
  0xcd   :  { %v188_v11 = vpop.f32.mrf.mxu1 }
  0xcf   :  { %v2037_v12 = vpop.f32.mrf.mxu1 }
  0xd1   :  { %v191_v13 = vpop.f32.mrf.mxu1 }
  0xd3   :  { %v2038_v14 = vpop.f32.mrf.mxu1 }
  0xd5   :  { %v238_v15 = vpop.f32.mrf.mxu1 }
  0xd6   :  { %v239_v17 = vadd.f32 %v238_v15, %v188_v11 }
  0xd7   :  { %v2043_v16 = vpop.f32.mrf.mxu1 }
  0xd8   :  { %v245_v22 = vadd.f32 %v2448_v18, %v239_v17 }
  0xd9   :  { %v241_v19 = vpop.f32.mrf.mxu1 }
  0xda   :  { %v242_v20 = vadd.f32 %v241_v19, %v191_v13  ;;  %v2457_v26 = vpack.c.bf16 %v245_v22, %v245_v22 }
  0xdb   :  { %v2044_v21 = vpop.f32.mrf.mxu1 }
  0xdc   :  { %v246_v23 = vadd.f32 %v2448_v18, %v242_v20 }
  0xde   :  { %v2226_v24 = vpack.i.bf16 %v246_v23, %v245_v22  ;;  %v2452_v25 = vpack.c.bf16 %v246_v23, %v246_v23 }
  0xe0   :  { %2227 = vrot.lane.b32.xlu0 %v2226_v24, %s2317_s26  ;;  %309 = vrot.lane.b32.xlu1 %v2452_v25, %s2318_s27 }
  0xe4   :  { %260 = vrot.lane.b32.xlu0 %v2457_v26, %s2318_s27 }
 0x152   :  { %v2228_v27 = vpop.permute.xlu0 %2227  ;;  %v310_v28 = vpop.permute.xlu1 %309 }
 0x153   :  { %v2230_v29 = vunpack.i.h.bf16 %v2228_v27  ;;  %v2229_v30 = vunpack.i.l.bf16 %v2228_v27  ;;  %v315_v31 = vsel %vm52_vm0, %v310_v28, 0 }
 0x154   :  { %2052 = vmatpush3.bf16.xpose.msra.mxu1 %v315_v31 }
 0x155   :  { %v2462_v32 = vpack.c.bf16 %v2230_v29, %v2230_v29  ;;  %v2464_v33 = vpack.c.bf16 %v2229_v30, %v2229_v30  ;;  %2063 = vmatprep.subr.bf16.mxu1 %v2315_v1 }
 0x156   :  { %v261_v34 = vpop.permute.xlu0 %260 }
 0x157   :  { %407 = vrot.lane.b32.xlu0 %v2462_v32, %s2318_s27  ;;  %358 = vrot.lane.b32.xlu1 %v2464_v33, %s2318_s27  ;;  %v266_v35 = vsel %vm52_vm0, %v261_v34, 0 }
 0x158   :  { %2046 = vmatpush3.bf16.xpose.msra.mxu0 %v266_v35 }
 0x159   :  { %2057 = vmatprep.subr.bf16.mxu0 %v2315_v1 }
 0x15b   :  { %2054 = vmatmul.mubr.msk.bf16.vlgmr.msra.gmra.mxu1 %vm52_vm0, %v2452_v25 }
 0x15c   :  { %2065 = vmatprep.mubr.msk.bf16.mxu1 %vm2316_vm1, %v2315_v1 }
 0x15f   :  { %2048 = vmatmul.mubr.msk.bf16.vlgmr.msra.gmra.mxu0 %vm52_vm0, %v2457_v26 }
 0x160   :  { %2059 = vmatprep.mubr.msk.bf16.mxu0 %vm2316_vm1, %v2315_v1 }
 0x1c9   :  { %v408_v36 = vpop.permute.xlu0 %407  ;;  %v359_v37 = vpop.permute.xlu1 %358 }
 0x1ca   :  { %v413_v38 = vsel %vm52_vm0, %v408_v36, 0  ;;  %v364_v39 = vsel %vm52_vm0, %v359_v37, 0 }
 0x1cb   :  { %2058 = vmatpush3.bf16.xpose.msra.mxu0 %v364_v39  ;;  %2064 = vmatpush3.bf16.xpose.msra.mxu1 %v413_v38 }
 0x1cc   :  { %2069 = vmatprep.subr.bf16.mxu0 %v2315_v1  ;;  %2075 = vmatprep.subr.bf16.mxu1 %v2315_v1 }
 0x1d2   :  { %2060 = vmatmul.mubr.msk.bf16.vlgmr.msra.gmra.mxu0 %vm52_vm0, %v2464_v33  ;;  %2066 = vmatmul.mubr.msk.bf16.vlgmr.msra.gmra.mxu1 %vm52_vm0, %v2462_v32 }
 0x1d3   :  { %2071 = vmatprep.mubr.msk.bf16.mxu0 %vm2316_vm1, %v2315_v1  ;;  %2077 = vmatprep.mubr.msk.bf16.mxu1 %vm2316_vm1, %v2315_v1 }
 0x21b   :  { %v351_v44 = vpop.f32.mrf.mxu1 }
 0x21c   :  { %v458_v45 = vsel %vm2493_vm2, %v351_v44, -1e+09 }
 0x21d   :  { %v2055_v46 = vpop.f32.mrf.mxu1  ;;  %v465_v47 = vsel %vm461_vm3, %v458_v45, -inf }
 0x21e   :  { %466 = vmax.xlane.f32.xlu0 %v465_v47 }
 0x21f   :  { %v302_v48 = vpop.f32.mrf.mxu0  ;;  %v354_v49 = vpop.f32.mrf.mxu1 }
 0x220   :  { %v457_v50 = vsel %vm2493_vm2, %v302_v48, -1e+09 }
 0x221   :  { %v2049_v51 = vpop.f32.mrf.mxu0  ;;  %v2056_v52 = vpop.f32.mrf.mxu1  ;;  %v462_v53 = vsel %vm461_vm3, %v457_v50, -inf }
 0x222   :  { %463 = vmax.xlane.f32.xlu1 %v462_v53  ;;  %v2538_v53 = vld [vmem:[%s2829_s3] sm:$0xff]  }
 0x223   :  { %v305_v54 = vpop.f32.mrf.mxu0 }
 0x225   :  { %v2050_v55 = vpop.f32.mrf.mxu0 }
 0x226   :  { %v2543_v55 = vld [vmem:[%s2829_s3 + $0x8] sm:$0xff]  }
 0x292   :  { %v400_v56 = vpop.f32.mrf.mxu0  ;;  %v449_v57 = vpop.f32.mrf.mxu1 }
 0x293   :  { %v459_v58 = vsel %vm2493_vm2, %v400_v56, -1e+09  ;;  %v460_v59 = vsel %vm2493_vm2, %v449_v57, -1e+09 }
 0x294   :  { %v2061_v60 = vpop.f32.mrf.mxu0  ;;  %v2067_v61 = vpop.f32.mrf.mxu1  ;;  %v468_v62 = vsel %vm461_vm3, %v459_v58, -inf  ;;  %v471_v63 = vsel %vm461_vm3, %v460_v59, -inf }
 0x295   :  { %469 = vmax.xlane.f32.xlu0 %v468_v62  ;;  %472 = vmax.xlane.f32.xlu1 %v471_v63 }
 0x296   :  { %v403_v2 = vpop.f32.mrf.mxu0  ;;  %v452_v3 = vpop.f32.mrf.mxu1 }
 0x298   :  { %v2062_v4 = vpop.f32.mrf.mxu0  ;;  %v2068_v5 = vpop.f32.mrf.mxu1 }
 0x2a6   :  { %559 = vrot.lane.b32.xlu1 %v2452_v25, %s2319_s2 }
 0x2a7   :  { %v467_v7 = vpop.xlane.xlu0 %466 }
 0x2a8   :  { %v475_v11 = vsub.f32 %v458_v45, %v467_v7 }
 0x2aa   :  { %v480_v13 = vmul.f32 1.442695, %v475_v11 }
 0x2ab   :  { %510 = vrot.lane.b32.xlu0 %v2457_v26, %s2319_s2  ;;  %v464_v10 = vpop.xlane.xlu1 %463 }
 0x2ac   :  { %v474_v12 = vsub.f32 %v457_v50, %v464_v10  ;;  %2245 = vpow2.f32 %v480_v13 }
 0x2ae   :  { %v478_v14 = vmul.f32 1.442695, %v474_v12 }
 0x2b0   :  { %2247 = vpow2.f32 %v478_v14 }
 0x2b9   :  { %v2246_v15 = vpop.eup %2245 }
 0x2ba   :  { %v489_v19 = vsel %vm461_vm3, %v2246_v15, 0.0 }
 0x2bd   :  { %v2248_v16 = vpop.eup %2247 }
 0x2be   :  { %v486_v17 = vsel %vm461_vm3, %v2248_v16, 0.0 }
 0x2ca   :  { %487 = vadd.xlane.f32.xlu0 %v486_v17  ;;  %490 = vadd.xlane.f32.xlu1 %v489_v19 }
 0x31e   :  { %v470_v20 = vpop.xlane.xlu0 %469  ;;  %v473_v21 = vpop.xlane.xlu1 %472 }
 0x31f   :  { %v476_v22 = vsub.f32 %v459_v58, %v470_v20  ;;  %v477_v23 = vsub.f32 %v460_v59, %v473_v21  ;;  %v2564_v21 = vld [vmem:[%s2830_s4] ss:$0 sm:$0xff]  ;;  %s1911_s4 = sshll.u32 %s2320_s17, 4  ;;  %s1912_s4 = int_to_ptr.vmem [resolvable:$true] %s1911_s4 }
 0x320   :  { %s2293_s18 = scalar_lea.vmem %s1912_s4, 32  ;;  %p2298_p1 = scmp.lt.s32.totalorder %s1912_s4, %s1912_s4 }
 0x321   :  { %v482_v24 = vmul.f32 1.442695, %v476_v22  ;;  %v484_v25 = vmul.f32 1.442695, %v477_v23  ;;  %p2294_p0 = scmp.ne.s32.totalorder %s1912_s4, %s2293_s18  ;;  %p2299_p2 = scmp.lt.s32.totalorder %s2293_s18, %s2293_s18 }
 0x322   :  { %v511_v26 = vpop.permute.xlu0 %510  ;;  %v560_v27 = vpop.permute.xlu1 %559 }
 0x323   :  { %2249 = vpow2.f32 %v482_v24  ;;  %v517_v28 = vsel %vm515_vm4, %v511_v26, 0  ;;  %v565_v29 = vsel %vm515_vm4, %v560_v27, 0  ;;  %p2300_p3 = por %p2299_p2, %p2298_p1 }
 0x324   :  { %2251 = vpow2.f32 %v484_v25  ;;  %2070 = vmatpush3.bf16.msra.mxu0 %v517_v28  ;;  %2076 = vmatpush3.bf16.msra.mxu1 %v565_v29 }
 0x325   :  { %2081 = vmatprep.subr.bf16.mxu0 %v2315_v1  ;;  %2087 = vmatprep.subr.bf16.mxu1 %v2315_v1  ;;  %p2301_p4 = pnand %p2300_p3, %p2294_p0 }
 0x330   :  { %v2250_v30 = vpop.eup %2249 }
 0x331   :  { %v2252_v31 = vpop.eup %2251  ;;  %v492_v34 = vsel %vm461_vm3, %v2250_v30, 0.0 }
 0x332   :  { %493 = vadd.xlane.f32.xlu0 %v492_v34  ;;  %v495_v35 = vsel %vm461_vm3, %v2252_v31, 0.0 }
 0x333   :  { %496 = vadd.xlane.f32.xlu1 %v495_v35 }
 0x344   :  { %607 = vrot.lane.b32.xlu1 %v2464_v33, %s2319_s2 }
 0x348   :  { %655 = vrot.lane.b32.xlu0 %v2462_v32, %s2319_s2 }
 0x353   :  { %v488_v36 = vpop.xlane.xlu0 %487  ;;  %v491_v37 = vpop.xlane.xlu1 %490 }
 0x354   :  { %2253 = vrcp.f32 %v488_v36 }
 0x355   :  { %2255 = vrcp.f32 %v491_v37 }
 0x361   :  { %v2254_v38 = vpop.eup %2253 }
 0x362   :  { %v2256_v39 = vpop.eup %2255  ;;  %v502_v40 = vmul.f32 %v2254_v38, %v2248_v16 }
 0x363   :  { %v503_v41 = vmul.f32 %v2256_v39, %v2246_v15 }
 0x364   :  { %v506_v42 = vpack.c.bf16 %v502_v40, %v502_v40 }
 0x365   :  { %v507_v44 = vpack.c.bf16 %v503_v41, %v503_v41 }
 0x366   :  { %2072 = vmatmul.mubr.msk.bf16.vlgmr.msra.gmra.mxu0 %vm461_vm3, %v506_v42 }
 0x367   :  { %2078 = vmatmul.mubr.msk.bf16.vlgmr.msra.gmra.mxu1 %vm461_vm3, %v507_v44  ;;  %2083 = vmatprep.mubr.msk.bf16.mxu0 %vm2316_vm1, %v2315_v1 }
 0x368   :  { %2089 = vmatprep.mubr.msk.bf16.mxu1 %vm2316_vm1, %v2315_v1 }
 0x3bb   :  { %v494_v32 = vpop.xlane.xlu0 %493 }
 0x3bc   :  { %2257 = vrcp.f32 %v494_v32  ;;  %v497_v33 = vpop.xlane.xlu1 %496 }
 0x3bd   :  { %2259 = vrcp.f32 %v497_v33  ;;  %v2584_v33 = vld [vmem:[%s2835_s9 + $0x18] sm:$0xff]  }
 0x3bf   :  { %v656_v45 = vpop.permute.xlu0 %655 }
 0x3c0   :  { %v661_v46 = vsel %vm515_vm4, %v656_v45, 0  ;;  %v608_v47 = vpop.permute.xlu1 %607 }
 0x3c1   :  { %v613_v48 = vsel %vm515_vm4, %v608_v47, 0  ;;  %2088 = vmatpush3.bf16.msra.mxu1 %v661_v46 }
 0x3c2   :  { %2082 = vmatpush3.bf16.msra.mxu0 %v613_v48  ;;  %2099 = vmatprep.subr.bf16.mxu1 %v2315_v1 }
 0x3c3   :  { %2093 = vmatprep.subr.bf16.mxu0 %v2315_v1 }
 0x3c9   :  { %v2258_v49 = vpop.eup %2257 }
 0x3ca   :  { %v2260_v50 = vpop.eup %2259  ;;  %v504_v51 = vmul.f32 %v2258_v49, %v2250_v30 }
 0x3cb   :  { %v505_v52 = vmul.f32 %v2260_v50, %v2252_v31 }
 0x3cc   :  { %v508_v54 = vpack.c.bf16 %v504_v51, %v504_v51 }
 0x3cd   :  { %v509_v56 = vpack.c.bf16 %v505_v52, %v505_v52 }
 0x3ce   :  { %2084 = vmatmul.mubr.msk.bf16.vlgmr.msra.gmra.mxu0 %vm461_vm3, %v508_v54  ;;  %v2591_v54 = vld [vmem:[%s2831_s5] ss:$0 sm:$0xff] }
 0x3cf   :  { %2090 = vmatmul.mubr.msk.bf16.vlgmr.msra.gmra.mxu1 %vm461_vm3, %v509_v56  ;;  %2094 = vmatpush3.bf16.msra.mxu0 %v2538_v53 }
 0x3d0   :  { %2095 = vmatprep.mubr.msk.bf16.mxu0 %vm2316_vm1, %v2315_v1  ;;  %2100 = vmatpush3.bf16.msra.mxu1 %v2543_v55 }
 0x3d1   :  { %2101 = vmatprep.mubr.msk.bf16.mxu1 %vm2316_vm1, %v2315_v1  ;;  %2105 = vmatprep.subr.bf16.mxu0 %v2315_v1 }
 0x3d2   :  { %2111 = vmatprep.subr.bf16.mxu1 %v2315_v1 }
 0x426   :  { %v553_v57 = vpop.f32.mrf.mxu0 }
 0x427   :  { %v601_v58 = vpop.f32.mrf.mxu1 }
 0x428   :  { %v703_v59 = vpack.c.bf16 %v601_v58, %v553_v57  ;;  %v2073_v60 = vpop.f32.mrf.mxu0 }
 0x429   :  { %v2079_v61 = vpop.f32.mrf.mxu1 }
 0x42a   :  { %2096 = vmatmul.mubr.msk.bf16.vlgmr.msra.gmra.mxu0 %vm52_vm0, %v703_v59  ;;  %v556_v62 = vpop.f32.mrf.mxu0  ;;  %v2597_v59 = vld [vmem:[%s2832_s6] ss:$0 sm:$0xff] }
 0x42b   :  { %v604_v63 = vpop.f32.mrf.mxu1  ;;  %2107 = vmatprep.mubr.msk.bf16.mxu0 %vm2316_vm1, %v2315_v1 }
 0x42c   :  { %v2074_v2 = vpop.f32.mrf.mxu0 }
 0x42d   :  { %v2080_v3 = vpop.f32.mrf.mxu1  ;;  %v2610_v2 = vld [vmem:[%s2835_s9 + $0x10] sm:$0xff]  }
 0x42e   :  { %v2617_v3 = vld [vmem:[%s2835_s9 + $0x8] sm:$0xff]  }
 0x48e   :  { %v649_v4 = vpop.f32.mrf.mxu0 }
 0x48f   :  { %v697_v5 = vpop.f32.mrf.mxu1 }
 0x490   :  { %v756_v7 = vpack.c.bf16 %v697_v5, %v649_v4  ;;  %v2085_v10 = vpop.f32.mrf.mxu0  ;;  %v2631_v4 = vld [vmem:[%s2834_s8] ss:$0 sm:$0xff] }
 0x491   :  { %v2091_v11 = vpop.f32.mrf.mxu1 }
 0x492   :  { %2102 = vmatmul.mubr.msk.bf16.vlgmr.msra.gmra.mxu1 %vm52_vm0, %v756_v7  ;;  %v652_v12 = vpop.f32.mrf.mxu0 }
 0x493   :  { %v700_v13 = vpop.f32.mrf.mxu1  ;;  %2119 = vmatprep.mubr.msk.bf16.mxu1 %vm2316_vm1, %v2315_v1  ;;  %2112 = vmatpush3.bf16.msra.mxu1 %v2584_v33 }
 0x494   :  { %v2086_v14 = vpop.f32.mrf.mxu0  ;;  %2113 = vmatprep.subr.bf16.mxu1 %v2315_v1 }
 0x495   :  { %v2092_v15 = vpop.f32.mrf.mxu1 }
 0x497   :  { %2114 = vmatpush3.bf16.msra.mxu1 %v2610_v2 }
 0x498   :  { %2115 = vmatprep.subr.bf16.mxu1 %v2315_v1 }
 0x49b   :  { %2116 = vmatpush3.bf16.msra.mxu1 %v2617_v3 }
 0x49c   :  { %2117 = vmatprep.subr.bf16.mxu1 %v2315_v1 }
 0x4ea   :  { %v747_v16 = vpop.f32.mrf.mxu0 }
 0x4eb   :  { %v754_v22 = vadd.f32 %v2564_v21, %v747_v16 }
 0x4ec   :  { %v2097_v17 = vpop.f32.mrf.mxu0 }
 0x4ed   :  { %v2641_v17 = vld [vmem:[%s2836_s10] ss:$0 sm:$0xff] }
 0x4ee   :  { %v750_v19 = vpop.f32.mrf.mxu0 }
 0x4ef   :  { %v755_v26 = vadd.f32 %v2564_v21, %v750_v19 }
 0x4f0   :  { %v2098_v20 = vpop.f32.mrf.mxu0 }
 0x552   :  { %v800_v23 = vpop.f32.mrf.mxu1 }
 0x553   :  { %v807_v24 = vadd.f32 %v800_v23, %v754_v22 }
 0x554   :  { %v2103_v25 = vpop.f32.mrf.mxu1 }
 0x555   :  { %v809_v27 = vadd.f32 %v807_v24, %v2435_v8 }
 0x556   :  { %v803_v28 = vpop.f32.mrf.mxu1 }
 0x557   :  { %v808_v29 = vadd.f32 %v803_v28, %v755_v26  ;;  %v811_v30 = vsel %vm52_vm0, %v809_v27, 0.0 }
 0x558   :  { %812 = vadd.xlane.f32.xlu1 %v811_v30  ;;  %v2104_v31 = vpop.f32.mrf.mxu1 }
 0x559   :  { %v810_v34 = vadd.f32 %v808_v29, %v2437_v9  ;;  %v2577_v9 = vld [vmem:[%s2833_s7] sm:$0xff]  }
 0x55a   :  { %2106 = vmatpush3.bf16.msra.mxu0 %v2577_v9 }
 0x55b   :  { %v814_v35 = vsel %vm52_vm0, %v810_v34, 0.0  ;;  %2123 = vmatprep.subr.bf16.mxu0 %v2315_v1 }
 0x55c   :  { %815 = vadd.xlane.f32.xlu0 %v814_v35 }
 0x5e1   :  { %v813_v36 = vpop.xlane.xlu1 %812 }
 0x5e2   :  { %v818_v37 = vmul.f32 0.0625, %v813_v36 }
 0x5e4   :  { %v820_v38 = vsub.f32 %v809_v27, %v818_v37 }
 0x5e5   :  { %v816_v39 = vpop.xlane.xlu0 %815 }
 0x5e6   :  { %v819_v40 = vmul.f32 0.0625, %v816_v39  ;;  %v822_v41 = vmul.f32 %v820_v38, %v820_v38 }
 0x5e8   :  { %v821_v42 = vsub.f32 %v810_v34, %v819_v40  ;;  %v824_v8 = vsel %vm52_vm0, %v822_v41, 0.0 }
 0x5e9   :  { %825 = vadd.xlane.f32.xlu0 %v824_v8 }
 0x5ea   :  { %v823_v44 = vmul.f32 %v821_v42, %v821_v42 }
 0x5ec   :  { %v827_v32 = vsel %vm52_vm0, %v823_v44, 0.0 }
 0x5ed   :  { %828 = vadd.xlane.f32.xlu1 %v827_v32 }
 0x672   :  { %v826_v45 = vpop.xlane.xlu0 %825 }
 0x673   :  { %v830_v46 = vmul.f32 0.0625, %v826_v45 }
 0x675   :  { %v832_v47 = vadd.f32 1e-05, %v830_v46 }
 0x676   :  { %v829_v48 = vpop.xlane.xlu1 %828 }
 0x677   :  { %2261 = vrsqrt.f32 %v832_v47  ;;  %v831_v49 = vmul.f32 0.0625, %v829_v48  ;;  %v2652_v48 = vld [vmem:[%s2837_s11] ss:$0 sm:$0xff] }
 0x679   :  { %v833_v50 = vadd.f32 1e-05, %v831_v49 }
 0x67b   :  { %2263 = vrsqrt.f32 %v833_v50  ;;  %v2657_v50 = vld [vmem:[%s2838_s12] ss:$0 sm:$0xff] }
 0x684   :  { %v2262_v51 = vpop.eup %2261 }
 0x685   :  { %v836_v52 = vmul.f32 %v2262_v51, %v820_v38 }
 0x687   :  { %v838_v58 = vmul.f32 %v2591_v54, %v836_v52 }
 0x688   :  { %v2264_v56 = vpop.eup %2263 }
 0x689   :  { %v837_v57 = vmul.f32 %v2264_v56, %v821_v42  ;;  %v840_v61 = vadd.f32 %v2597_v59, %v838_v58 }
 0x68b   :  { %v839_v60 = vmul.f32 %v2591_v54, %v837_v57 }
 0x68d   :  { %v841_v62 = vadd.f32 %v2597_v59, %v839_v60 }
 0x68f   :  { %v842_v63 = vpack.c.bf16 %v841_v62, %v840_v61 }
 0x691   :  { %2108 = vmatmul.mubr.msk.bf16.vlgmr.msra.gmra.mxu0 %vm52_vm0, %v842_v63 }
 0x692   :  { %2124 = vmatpush3.bf16.msra.mxu0 %v2404_v0  ;;  %2125 = vmatprep.mubr.msk.bf16.mxu0 %vm2316_vm1, %v2315_v1  ;;  %v2624_v0 = vld [vmem:[%s2835_s9] sm:$0xff]  }
 0x693   :  { %2129 = vmatprep.subr.bf16.mxu0 %v2315_v1  ;;  %2118 = vmatpush3.bf16.msra.mxu1 %v2624_v0 }
 0x694   :  { %2135 = vmatprep.subr.bf16.mxu1 %v2315_v1 }
 0x751   :  { %v886_v5 = vpop.f32.mrf.mxu0 }
 0x752   :  { %v887_v10 = vadd.f32 %v2631_v4, %v886_v5 }
 0x753   :  { %v2109_v7 = vpop.f32.mrf.mxu0 }
 0x754   :  { %v893_v14 = vmax.f32 %v887_v10, 0.0 }
 0x755   :  { %v889_v11 = vpop.f32.mrf.mxu0 }
 0x756   :  { %v890_v12 = vadd.f32 %v2631_v4, %v889_v11 }
 0x757   :  { %v2110_v13 = vpop.f32.mrf.mxu0 }
 0x758   :  { %v894_v15 = vmax.f32 %v890_v12, 0.0 }
 0x75a   :  { %v895_v16 = vpack.c.bf16 %v894_v15, %v893_v14 }
 0x75c   :  { %2120 = vmatmul.mubr.msk.bf16.vlgmr.msra.gmra.mxu1 %vm920_vm5, %v895_v16 }
 0x75d   :  { %2137 = vmatprep.mubr.msk.bf16.mxu1 %vm2316_vm1, %v2315_v1 }
 0x81c   :  { %v958_v19 = vpop.f32.mrf.mxu1 }
 0x81d   :  { %v959_v20 = vadd.f32 %v2641_v17, %v958_v19 }
 0x81e   :  { %v2121_v22 = vpop.f32.mrf.mxu1 }
 0x81f   :  { %v965_v23 = vadd.f32 %v959_v20, %v840_v61 }
 0x820   :  { %v961_v24 = vpop.f32.mrf.mxu1 }
 0x821   :  { %v962_v25 = vadd.f32 %v2641_v17, %v961_v24  ;;  %v967_v26 = vsel %vm52_vm0, %v965_v23, 0.0 }
 0x822   :  { %968 = vadd.xlane.f32.xlu0 %v967_v26  ;;  %v2122_v27 = vpop.f32.mrf.mxu1 }
 0x823   :  { %v966_v28 = vadd.f32 %v962_v25, %v841_v62 }
 0x825   :  { %v970_v29 = vsel %vm52_vm0, %v966_v28, 0.0 }
 0x826   :  { %971 = vadd.xlane.f32.xlu1 %v970_v29 }
 0x8ab   :  { %v969_v30 = vpop.xlane.xlu0 %968 }
 0x8ac   :  { %v973_v31 = vmul.f32 0.0625, %v969_v30 }
 0x8ae   :  { %v975_v34 = vsub.f32 %v965_v23, %v973_v31 }
 0x8af   :  { %v972_v35 = vpop.xlane.xlu1 %971 }
 0x8b0   :  { %v974_v36 = vmul.f32 0.0625, %v972_v35  ;;  %v977_v37 = vmul.f32 %v975_v34, %v975_v34 }
 0x8b2   :  { %v976_v38 = vsub.f32 %v966_v28, %v974_v36  ;;  %v979_v39 = vsel %vm52_vm0, %v977_v37, 0.0 }
 0x8b3   :  { %980 = vadd.xlane.f32.xlu0 %v979_v39 }
 0x8b4   :  { %v978_v40 = vmul.f32 %v976_v38, %v976_v38 }
 0x8b6   :  { %v982_v41 = vsel %vm52_vm0, %v978_v40, 0.0 }
 0x8b7   :  { %983 = vadd.xlane.f32.xlu1 %v982_v41 }
 0x93c   :  { %v981_v42 = vpop.xlane.xlu0 %980 }
 0x93d   :  { %v985_v8 = vmul.f32 0.0625, %v981_v42 }
 0x93f   :  { %v987_v44 = vadd.f32 1e-05, %v985_v8 }
 0x940   :  { %v984_v32 = vpop.xlane.xlu1 %983 }
 0x941   :  { %2265 = vrsqrt.f32 %v987_v44  ;;  %v986_v45 = vmul.f32 0.0625, %v984_v32 }
 0x943   :  { %v988_v46 = vadd.f32 1e-05, %v986_v45 }
 0x945   :  { %2267 = vrsqrt.f32 %v988_v46 }
 0x94e   :  { %v2266_v47 = vpop.eup %2265 }
 0x94f   :  { %v991_v49 = vmul.f32 %v2266_v47, %v975_v34 }
 0x951   :  { %v993_v51 = vmul.f32 %v2652_v48, %v991_v49 }
 0x952   :  { %v2268_v52 = vpop.eup %2267 }
 0x953   :  { %v995_v56 = vadd.f32 %v2657_v50, %v993_v51  ;;  %v992_v57 = vmul.f32 %v2268_v52, %v976_v38 }
 0x955   :  { %997 = vst.msk [vmem:[#allocation2 + $0x8] sm:$0xff] %vm52_vm0, %v995_v56  ;;  %v994_v58 = vmul.f32 %v2652_v48, %v992_v57 }
 0x957   :  { %v996_v60 = vadd.f32 %v2657_v50, %v994_v58 }
 0x959   :  { %998 = vst.msk [vmem:[#allocation2 + $0x18] sm:$0xff] %vm52_vm0, %v996_v60 }
 0x95c   :  { %v1002_v61 = vld [vmem:[#allocation2 + $0x7] sm:$0xff] }
 0x95d   :  { %v2672_v7 = vld [vmem:[#allocation2 + $0x8] sm:$0xff] }
 0x960   :  { %v1003_v62 = vld [vmem:[#allocation2 + $0x17] sm:$0xff] }
 0x961   :  { %v1004_v63 = vpack.c.bf16 %v1003_v62, %v1002_v61  ;;  %v2670_v5 = vld [vmem:[#allocation2 + $0x18] sm:$0xff] }
 0x962   :  { %v1001_v10 = vpack.c.bf16 %v2670_v5, %v2672_v7 }
 0x963   :  { %2126 = vmatmul.mubr.msk.bf16.vlgmr.msra.gmra.mxu0 %vm52_vm0, %v1004_v63 }
 0x964   :  { %2130 = vmatpush3.bf16.msra.mxu0 %v2429_v6  ;;  %2131 = vmatprep.mubr.msk.bf16.mxu0 %vm2316_vm1, %v2315_v1 }
 0x965   :  { %2141 = vmatprep.subr.bf16.mxu0 %v2315_v1 }
 0x96b   :  { %2132 = vmatmul.mubr.msk.bf16.vlgmr.msra.gmra.mxu0 %vm52_vm0, %v1001_v10 }
 0x96c   :  { %2143 = vmatprep.mubr.msk.bf16.mxu0 %vm2316_vm1, %v2315_v1 }
 0xa23   :  { %v1042_v11 = vpop.f32.mrf.mxu0 }
 0xa25   :  { %v2127_v12 = vpop.f32.mrf.mxu0 }
 0xa27   :  { %v1045_v6 = vpop.f32.mrf.mxu0 }
 0xa29   :  { %v2128_v13 = vpop.f32.mrf.mxu0 }
 0xa2b   :  { %v1086_v14 = vpop.f32.mrf.mxu0 }
 0xa2c   :  { %v1087_v15 = vadd.f32 %v1086_v14, %v1042_v11 }
 0xa2d   :  { %v2133_v16 = vpop.f32.mrf.mxu0 }
 0xa2e   :  { %v1093_v19 = vadd.f32 %v2448_v18, %v1087_v15 }
 0xa2f   :  { %v1089_v20 = vpop.f32.mrf.mxu0 }
 0xa30   :  { %v1090_v22 = vadd.f32 %v1089_v20, %v1045_v6  ;;  %v1103_v23 = vpack.c.bf16 %v1093_v19, %v1093_v19 }
 0xa31   :  { %v2134_v24 = vpop.f32.mrf.mxu0 }
 0xa32   :  { %v1094_v25 = vadd.f32 %v2448_v18, %v1090_v22  ;;  %1108 = vrot.lane.b32.xlu1 %v1103_v23, %s2318_s27 }
 0xa34   :  { %v2231_v26 = vpack.i.bf16 %v1094_v25, %v1093_v19  ;;  %v2682_v27 = vpack.c.bf16 %v1094_v25, %v1094_v25 }
 0xa36   :  { %2232 = vrot.lane.b32.xlu0 %v2231_v26, %s2317_s26  ;;  %1157 = vrot.lane.b32.xlu1 %v2682_v27, %s2318_s27 }
 0xaa4   :  { %v1109_v28 = vpop.permute.xlu1 %1108 }
 0xaa5   :  { %v1114_v29 = vsel %vm52_vm0, %v1109_v28, 0 }
 0xaa6   :  { %2136 = vmatpush3.bf16.xpose.msra.mxu1 %v1114_v29 }
 0xaa7   :  { %2147 = vmatprep.subr.bf16.mxu1 %v2315_v1 }
 0xaa8   :  { %v2233_v30 = vpop.permute.xlu0 %2232  ;;  %v1158_v31 = vpop.permute.xlu1 %1157 }
 0xaa9   :  { %v2235_v34 = vunpack.i.h.bf16 %v2233_v30  ;;  %v2234_v18 = vunpack.i.l.bf16 %v2233_v30  ;;  %v1163_v35 = vsel %vm52_vm0, %v1158_v31, 0 }
 0xaaa   :  { %2142 = vmatpush3.bf16.xpose.msra.mxu0 %v1163_v35 }
 0xaab   :  { %v2690_v36 = vpack.c.bf16 %v2235_v34, %v2235_v34  ;;  %v2692_v37 = vpack.c.bf16 %v2234_v18, %v2234_v18  ;;  %2153 = vmatprep.subr.bf16.mxu0 %v2315_v1 }
 0xaad   :  { %2138 = vmatmul.mubr.msk.bf16.vlgmr.msra.gmra.mxu1 %vm52_vm0, %v1103_v23  ;;  %1206 = vrot.lane.b32.xlu0 %v2692_v37, %s2318_s27 }
 0xaae   :  { %1255 = vrot.lane.b32.xlu1 %v2690_v36, %s2318_s27  ;;  %2149 = vmatprep.mubr.msk.bf16.mxu1 %vm2316_vm1, %v2315_v1 }
 0xab1   :  { %2144 = vmatmul.mubr.msk.bf16.vlgmr.msra.gmra.mxu0 %vm52_vm0, %v2682_v27 }
 0xab2   :  { %2155 = vmatprep.mubr.msk.bf16.mxu0 %vm2316_vm1, %v2315_v1 }
 0xb1f   :  { %v1207_v38 = vpop.permute.xlu0 %1206 }
 0xb20   :  { %v1212_v39 = vsel %vm52_vm0, %v1207_v38, 0  ;;  %v1256_v40 = vpop.permute.xlu1 %1255 }
 0xb21   :  { %v1261_v41 = vsel %vm52_vm0, %v1256_v40, 0  ;;  %2148 = vmatpush3.bf16.xpose.msra.mxu1 %v1212_v39 }
 0xb22   :  { %2154 = vmatpush3.bf16.xpose.msra.mxu0 %v1261_v41  ;;  %2159 = vmatprep.subr.bf16.mxu1 %v2315_v1 }
 0xb23   :  { %2165 = vmatprep.subr.bf16.mxu0 %v2315_v1 }
 0xb28   :  { %2150 = vmatmul.mubr.msk.bf16.vlgmr.msra.gmra.mxu1 %vm52_vm0, %v2692_v37 }
 0xb29   :  { %2156 = vmatmul.mubr.msk.bf16.vlgmr.msra.gmra.mxu0 %vm52_vm0, %v2690_v36  ;;  %2161 = vmatprep.mubr.msk.bf16.mxu1 %vm2316_vm1, %v2315_v1 }
 0xb2a   :  { %2167 = vmatprep.mubr.msk.bf16.mxu0 %vm2316_vm1, %v2315_v1 }
 0xb6d   :  { %v1150_v42 = vpop.f32.mrf.mxu1 }
 0xb6e   :  { %v1303_v8 = vsel %vm2493_vm2, %v1150_v42, -1e+09 }
 0xb6f   :  { %v2139_v44 = vpop.f32.mrf.mxu1  ;;  %v1307_v32 = vsel %vm461_vm3, %v1303_v8, -inf }
 0xb70   :  { %1308 = vmax.xlane.f32.xlu0 %v1307_v32 }
 0xb71   :  { %v1153_v45 = vpop.f32.mrf.mxu1  ;;  %v1199_v46 = vpop.f32.mrf.mxu0 }
 0xb72   :  { %v1304_v47 = vsel %vm2493_vm2, %v1199_v46, -1e+09 }
 0xb73   :  { %v2140_v49 = vpop.f32.mrf.mxu1  ;;  %v2145_v51 = vpop.f32.mrf.mxu0  ;;  %v1310_v52 = vsel %vm461_vm3, %v1304_v47, -inf }
 0xb74   :  { %1311 = vmax.xlane.f32.xlu1 %v1310_v52 }
 0xb75   :  { %v1202_v56 = vpop.f32.mrf.mxu0 }
 0xb77   :  { %v2146_v57 = vpop.f32.mrf.mxu0 }
 0xb85   :  { %1355 = vrot.lane.b32.xlu1 %v1103_v23, %s2319_s2 }
 0xbe8   :  { %v1248_v58 = vpop.f32.mrf.mxu1 }
 0xbe9   :  { %v1305_v60 = vsel %vm2493_vm2, %v1248_v58, -1e+09  ;;  %v1297_v61 = vpop.f32.mrf.mxu0 }
 0xbea   :  { %v2151_v62 = vpop.f32.mrf.mxu1  ;;  %v1313_v63 = vsel %vm461_vm3, %v1305_v60, -inf  ;;  %v1306_v10 = vsel %vm2493_vm2, %v1297_v61, -1e+09 }
 0xbeb   :  { %v2157_v11 = vpop.f32.mrf.mxu0  ;;  %1314 = vmax.xlane.f32.xlu0 %v1313_v63  ;;  %v1316_v14 = vsel %vm461_vm3, %v1306_v10, -inf }
 0xbec   :  { %v1251_v12 = vpop.f32.mrf.mxu1 }
 0xbed   :  { %v1300_v6 = vpop.f32.mrf.mxu0 }
 0xbee   :  { %v2152_v13 = vpop.f32.mrf.mxu1 }
 0xbef   :  { %v2158_v15 = vpop.f32.mrf.mxu0  ;;  %1317 = vmax.xlane.f32.xlu0 %v1316_v14 }
 0xbf9   :  { %v1309_v16 = vpop.xlane.xlu0 %1308 }
 0xbfa   :  { %v1319_v19 = vsub.f32 %v1303_v8, %v1309_v16 }
 0xbfc   :  { %v1323_v20 = vmul.f32 1.442695, %v1319_v19 }
 0xbfd   :  { %v1312_v22 = vpop.xlane.xlu1 %1311 }
 0xbfe   :  { %2269 = vpow2.f32 %v1323_v20  ;;  %v1320_v23 = vsub.f32 %v1304_v47, %v1312_v22 }
 0xc00   :  { %v1325_v24 = vmul.f32 1.442695, %v1320_v23 }
 0xc01   :  { %v1356_v25 = vpop.permute.xlu1 %1355 }
 0xc02   :  { %2271 = vpow2.f32 %v1325_v24  ;;  %v1361_v43 = vsel %vm515_vm4, %v1356_v25, 0 }
 0xc03   :  { %2160 = vmatpush3.bf16.msra.mxu1 %v1361_v43 }
 0xc04   :  { %2171 = vmatprep.subr.bf16.mxu1 %v2315_v1 }
 0xc0b   :  { %v2270_v26 = vpop.eup %2269 }
 0xc0c   :  { %v1331_v28 = vsel %vm461_vm3, %v2270_v26, 0.0 }
 0xc0d   :  { %1332 = vadd.xlane.f32.xlu1 %v1331_v28 }
 0xc0f   :  { %v2272_v29 = vpop.eup %2271 }
 0xc10   :  { %v1334_v30 = vsel %vm461_vm3, %v2272_v29, 0.0 }
 0xc11   :  { %1335 = vadd.xlane.f32.xlu0 %v1334_v30 }
 0xc74   :  { %v1315_v31 = vpop.xlane.xlu0 %1314 }
 0xc75   :  { %v1321_v34 = vsub.f32 %v1305_v60, %v1315_v31 }
 0xc77   :  { %v1327_v18 = vmul.f32 1.442695, %v1321_v34 }
 0xc78   :  { %v1318_v35 = vpop.xlane.xlu0 %1317 }
 0xc79   :  { %2273 = vpow2.f32 %v1327_v18  ;;  %v1322_v38 = vsub.f32 %v1306_v10, %v1318_v35 }
 0xc7b   :  { %v1329_v39 = vmul.f32 1.442695, %v1322_v38 }
 0xc7d   :  { %2275 = vpow2.f32 %v1329_v39 }
 0xc86   :  { %v2274_v40 = vpop.eup %2273 }
 0xc87   :  { %v1337_v41 = vsel %vm461_vm3, %v2274_v40, 0.0 }
 0xc88   :  { %1338 = vadd.xlane.f32.xlu1 %v1337_v41 }
 0xc8a   :  { %v2276_v42 = vpop.eup %2275 }
 0xc8b   :  { %v1340_v8 = vsel %vm461_vm3, %v2276_v42, 0.0 }
 0xc8c   :  { %1341 = vadd.xlane.f32.xlu0 %v1340_v8 }
 0xc96   :  { %v1333_v44 = vpop.xlane.xlu1 %1332 }
 0xc97   :  { %2277 = vrcp.f32 %v1333_v44 }
 0xc99   :  { %1451 = vrot.lane.b32.xlu1 %v2692_v37, %s2319_s2 }
 0xc9a   :  { %v1336_v47 = vpop.xlane.xlu0 %1335 }
 0xc9b   :  { %2279 = vrcp.f32 %v1336_v47 }
 0xc9d   :  { %1499 = vrot.lane.b32.xlu1 %v2690_v36, %s2319_s2 }
 0xca2   :  { %1403 = vrot.lane.b32.xlu0 %v2682_v27, %s2319_s2 }
 0xca4   :  { %v2278_v32 = vpop.eup %2277 }
 0xca5   :  { %v1347_v45 = vmul.f32 %v2278_v32, %v2270_v26 }
 0xca7   :  { %v1351_v46 = vpack.c.bf16 %v1347_v45, %v1347_v45 }
 0xca8   :  { %v2280_v51 = vpop.eup %2279 }
 0xca9   :  { %2162 = vmatmul.mubr.msk.bf16.vlgmr.msra.gmra.mxu1 %vm461_vm3, %v1351_v46  ;;  %v1348_v27 = vmul.f32 %v2280_v51, %v2272_v29 }
 0xcaa   :  { %2173 = vmatprep.mubr.msk.bf16.mxu1 %vm2316_vm1, %v2315_v1 }
 0xcab   :  { %v1352_v60 = vpack.c.bf16 %v1348_v27, %v1348_v27 }
 0xd11   :  { %v1339_v49 = vpop.xlane.xlu1 %1338 }
 0xd12   :  { %2281 = vrcp.f32 %v1339_v49 }
 0xd15   :  { %v1452_v37 = vpop.permute.xlu1 %1451  ;;  %v1342_v52 = vpop.xlane.xlu0 %1341 }
 0xd16   :  { %v1457_v36 = vsel %vm515_vm4, %v1452_v37, 0  ;;  %2283 = vrcp.f32 %v1342_v52 }
 0xd17   :  { %2172 = vmatpush3.bf16.msra.mxu1 %v1457_v36 }
 0xd18   :  { %2183 = vmatprep.subr.bf16.mxu1 %v2315_v1 }
 0xd19   :  { %v1404_v56 = vpop.permute.xlu0 %1403  ;;  %v1500_v58 = vpop.permute.xlu1 %1499 }
 0xd1a   :  { %v1409_v57 = vsel %vm515_vm4, %v1404_v56, 0  ;;  %v1505_v61 = vsel %vm515_vm4, %v1500_v58, 0 }
 0xd1b   :  { %2166 = vmatpush3.bf16.msra.mxu0 %v1409_v57 }
 0xd1c   :  { %2177 = vmatprep.subr.bf16.mxu0 %v2315_v1 }
 0xd1e   :  { %2168 = vmatmul.mubr.msk.bf16.vlgmr.msra.gmra.mxu0 %vm461_vm3, %v1352_v60 }
 0xd1f   :  { %v2282_v62 = vpop.eup %2281  ;;  %2178 = vmatpush3.bf16.msra.mxu0 %v1505_v61  ;;  %2179 = vmatprep.mubr.msk.bf16.mxu0 %vm2316_vm1, %v2315_v1 }
 0xd20   :  { %v1349_v63 = vmul.f32 %v2282_v62, %v2274_v40  ;;  %2189 = vmatprep.subr.bf16.mxu0 %v2315_v1 }
 0xd22   :  { %v1353_v10 = vpack.c.bf16 %v1349_v63, %v1349_v63 }
 0xd23   :  { %v2284_v11 = vpop.eup %2283 }
 0xd24   :  { %2174 = vmatmul.mubr.msk.bf16.vlgmr.msra.gmra.mxu1 %vm461_vm3, %v1353_v10  ;;  %v1350_v12 = vmul.f32 %v2284_v11, %v2276_v42 }
 0xd25   :  { %2184 = vmatpush3.bf16.msra.mxu1 %v2538_v53  ;;  %2185 = vmatprep.mubr.msk.bf16.mxu1 %vm2316_vm1, %v2315_v1 }
 0xd26   :  { %v1354_v6 = vpack.c.bf16 %v1350_v12, %v1350_v12  ;;  %2195 = vmatprep.subr.bf16.mxu1 %v2315_v1 }
 0xd28   :  { %2180 = vmatmul.mubr.msk.bf16.vlgmr.msra.gmra.mxu0 %vm461_vm3, %v1354_v6 }
 0xd29   :  { %2190 = vmatpush3.bf16.msra.mxu0 %v2543_v55  ;;  %2191 = vmatprep.mubr.msk.bf16.mxu0 %vm2316_vm1, %v2315_v1 }
 0xd2a   :  { %2201 = vmatprep.subr.bf16.mxu0 %v2315_v1 }
 0xd69   :  { %v1397_v13 = vpop.f32.mrf.mxu1 }
 0xd6b   :  { %v2163_v14 = vpop.f32.mrf.mxu1 }
 0xd6d   :  { %v1400_v15 = vpop.f32.mrf.mxu1 }
 0xd6f   :  { %v2164_v16 = vpop.f32.mrf.mxu1 }
 0xdde   :  { %v1445_v53 = vpop.f32.mrf.mxu0 }
 0xddf   :  { %v1547_v19 = vpack.c.bf16 %v1445_v53, %v1397_v13 }
 0xde0   :  { %v2169_v20 = vpop.f32.mrf.mxu0 }
 0xde1   :  { %2186 = vmatmul.mubr.msk.bf16.vlgmr.msra.gmra.mxu1 %vm52_vm0, %v1547_v19 }
 0xde2   :  { %v1448_v22 = vpop.f32.mrf.mxu0  ;;  %2196 = vmatpush3.bf16.msra.mxu1 %v2577_v9  ;;  %2197 = vmatprep.mubr.msk.bf16.mxu1 %vm2316_vm1, %v2315_v1 }
 0xde3   :  { %2213 = vmatprep.subr.mxu1 %v2315_v1 }
 0xde4   :  { %v2170_v55 = vpop.f32.mrf.mxu0  ;;  %v1493_v23 = vpop.f32.mrf.mxu1 }
 0xde6   :  { %v2175_v24 = vpop.f32.mrf.mxu1 }
 0xde8   :  { %v1496_v25 = vpop.f32.mrf.mxu1  ;;  %v1541_v43 = vpop.f32.mrf.mxu0 }
 0xde9   :  { %v1594_v26 = vpack.c.bf16 %v1541_v43, %v1493_v23 }
 0xdea   :  { %v2176_v28 = vpop.f32.mrf.mxu1  ;;  %v2181_v29 = vpop.f32.mrf.mxu0 }
 0xdeb   :  { %2192 = vmatmul.mubr.msk.bf16.vlgmr.msra.gmra.mxu0 %vm52_vm0, %v1594_v26 }
 0xdec   :  { %v1544_v30 = vpop.f32.mrf.mxu0  ;;  %2202 = vmatpush3.bf16.msra.mxu0 %v2584_v33  ;;  %2209 = vmatprep.mubr.msk.bf16.mxu0 %vm2316_vm1, %v2315_v1 }
 0xded   :  { %2203 = vmatprep.subr.bf16.mxu0 %v2315_v1 }
 0xdee   :  { %v2182_v9 = vpop.f32.mrf.mxu0 }
 0xdf0   :  { %2204 = vmatpush3.bf16.msra.mxu0 %v2610_v2 }
 0xdf1   :  { %2205 = vmatprep.subr.bf16.mxu0 %v2315_v1 }
 0xdf4   :  { %2206 = vmatpush3.bf16.msra.mxu0 %v2617_v3 }
 0xdf5   :  { %2207 = vmatprep.subr.bf16.mxu0 %v2315_v1 }
 0xdf8   :  { %2208 = vmatpush3.bf16.msra.mxu0 %v2624_v0 }
 0xea1   :  { %v1585_v31 = vpop.f32.mrf.mxu1 }
 0xea2   :  { %v1592_v35 = vadd.f32 %v2564_v21, %v1585_v31 }
 0xea3   :  { %v2187_v34 = vpop.f32.mrf.mxu1 }
 0xea5   :  { %v1588_v18 = vpop.f32.mrf.mxu1 }
 0xea6   :  { %v1593_v41 = vadd.f32 %v2564_v21, %v1588_v18 }
 0xea7   :  { %v2188_v33 = vpop.f32.mrf.mxu1 }
 0xeab   :  { %v1632_v38 = vpop.f32.mrf.mxu0 }
 0xeac   :  { %v1639_v39 = vadd.f32 %v1632_v38, %v1592_v35 }
 0xead   :  { %v2193_v40 = vpop.f32.mrf.mxu0 }
 0xeae   :  { %v1641_v2 = vadd.f32 %v1639_v39, %v2672_v7 }
 0xeaf   :  { %v1635_v42 = vpop.f32.mrf.mxu0 }
 0xeb0   :  { %v1640_v8 = vadd.f32 %v1635_v42, %v1593_v41  ;;  %v1643_v3 = vsel %vm52_vm0, %v1641_v2, 0.0  ;;  %v1818_v42 = vld [vmem:[%s2839_s13] sm:$0xff] }
 0xeb1   :  { %v2194_v44 = vpop.f32.mrf.mxu0  ;;  %1644 = vadd.xlane.f32.xlu0 %v1643_v3 }
 0xeb2   :  { %v1642_v0 = vadd.f32 %v1640_v8, %v2670_v5 }
 0xeb4   :  { %v1646_v32 = vsel %vm52_vm0, %v1642_v0, 0.0 }
 0xeb5   :  { %1647 = vadd.xlane.f32.xlu1 %v1646_v32 }
 0xf3a   :  { %v1645_v45 = vpop.xlane.xlu0 %1644 }
 0xf3b   :  { %v1649_v46 = vmul.f32 0.0625, %v1645_v45 }
 0xf3d   :  { %v1651_v47 = vsub.f32 %v1641_v2, %v1649_v46  ;;  %v1819_v2 = vld [vmem:[%s2839_s13 + $0x8] sm:$0xff] }
 0xf3e   :  { %v1648_v49 = vpop.xlane.xlu1 %1647 }
 0xf3f   :  { %v1650_v51 = vmul.f32 0.0625, %v1648_v49  ;;  %v1653_v37 = vmul.f32 %v1651_v47, %v1651_v47 }
 0xf41   :  { %v1652_v21 = vsub.f32 %v1642_v0, %v1650_v51  ;;  %v1655_v7 = vsel %vm52_vm0, %v1653_v37, 0.0 }
 0xf42   :  { %1656 = vadd.xlane.f32.xlu0 %v1655_v7 }
 0xf43   :  { %v1654_v52 = vmul.f32 %v1652_v21, %v1652_v21 }
 0xf45   :  { %v1658_v36 = vsel %vm52_vm0, %v1654_v52, 0.0 }
 0xf46   :  { %1659 = vadd.xlane.f32.xlu0 %v1658_v36 }
 0xfcb   :  { %v1657_v27 = vpop.xlane.xlu0 %1656 }
 0xfcc   :  { %v1661_v56 = vmul.f32 0.0625, %v1657_v27 }
 0xfce   :  { %v1663_v5 = vadd.f32 1e-05, %v1661_v56 }
 0xfcf   :  { %v1660_v57 = vpop.xlane.xlu0 %1659 }
 0xfd0   :  { %2285 = vrsqrt.f32 %v1663_v5  ;;  %v1662_v58 = vmul.f32 0.0625, %v1660_v57 }
 0xfd2   :  { %v1664_v60 = vadd.f32 1e-05, %v1662_v58 }
 0xfd4   :  { %2287 = vrsqrt.f32 %v1664_v60 }
 0xfdd   :  { %v2286_v61 = vpop.eup %2285 }
 0xfde   :  { %v1667_v62 = vmul.f32 %v2286_v61, %v1651_v47 }
 0xfe0   :  { %v1669_v11 = vmul.f32 %v2591_v54, %v1667_v62 }
 0xfe1   :  { %v2288_v63 = vpop.eup %2287 }
 0xfe2   :  { %v1668_v10 = vmul.f32 %v2288_v63, %v1652_v21  ;;  %v1671_v6 = vadd.f32 %v2597_v59, %v1669_v11 }
 0xfe4   :  { %v1670_v12 = vmul.f32 %v2591_v54, %v1668_v10 }
 0xfe6   :  { %v1672_v13 = vadd.f32 %v2597_v59, %v1670_v12 }
 0xfe8   :  { %v1673_v14 = vpack.c.bf16 %v1672_v13, %v1671_v6 }
 0xfea   :  { %2198 = vmatmul.mubr.msk.bf16.vlgmr.msra.gmra.mxu1 %vm52_vm0, %v1673_v14 }
 0xfeb   :  { %2217 = vmatprep.mubr.msk.f32.mxu1 %vm2316_vm1, %v2315_v1  ;;  %2214 = vmatpush3.msra.mxu1 %v1819_v2 }
 0xfec   :  { %2215 = vmatprep.subr.mxu1 %v2315_v1 }
 0xfed   :  { %2216 = vmatpush3.msra.mxu1 %v1818_v42 }
0x10aa   :  { %v1711_v15 = vpop.f32.mrf.mxu1 }
0x10ab   :  { %v1712_v53 = vadd.f32 %v2631_v4, %v1711_v15  ;;  %v1966_v15 = vld [vmem:[%s2840_s14] ss:$0 sm:$0xff] }
0x10ac   :  { %v2199_v16 = vpop.f32.mrf.mxu1 }
0x10ad   :  { %v1718_v55 = vmax.f32 %v1712_v53, 0.0 }
0x10ae   :  { %v1714_v19 = vpop.f32.mrf.mxu1 }
0x10af   :  { %v1715_v20 = vadd.f32 %v2631_v4, %v1714_v19 }
0x10b0   :  { %v2200_v22 = vpop.f32.mrf.mxu1 }
0x10b1   :  { %v1719_v54 = vmax.f32 %v1715_v20, 0.0 }
0x10b3   :  { %v1720_v23 = vpack.c.bf16 %v1719_v54, %v1718_v55 }
0x10b5   :  { %2210 = vmatmul.mubr.msk.bf16.vlgmr.msra.gmra.mxu0 %vm920_vm5, %v1720_v23 }
0x1175   :  { %v1758_v59 = vpop.f32.mrf.mxu0 }
0x1176   :  { %v1759_v24 = vadd.f32 %v2641_v17, %v1758_v59 }
0x1177   :  { %v2211_v25 = vpop.f32.mrf.mxu0 }
0x1178   :  { %v1765_v43 = vadd.f32 %v1759_v24, %v1671_v6 }
0x1179   :  { %v1761_v26 = vpop.f32.mrf.mxu0 }
0x117a   :  { %v1762_v28 = vadd.f32 %v2641_v17, %v1761_v26  ;;  %v1767_v29 = vsel %vm52_vm0, %v1765_v43, 0.0 }
0x117b   :  { %1768 = vadd.xlane.f32.xlu1 %v1767_v29  ;;  %v2212_v30 = vpop.f32.mrf.mxu0 }
0x117c   :  { %v1766_v9 = vadd.f32 %v1762_v28, %v1672_v13 }
0x117e   :  { %v1770_v4 = vsel %vm52_vm0, %v1766_v9, 0.0 }
0x117f   :  { %1771 = vadd.xlane.f32.xlu0 %v1770_v4 }
0x1204   :  { %v1769_v31 = vpop.xlane.xlu1 %1768 }
0x1205   :  { %v1773_v34 = vmul.f32 0.0625, %v1769_v31 }
0x1207   :  { %v1775_v18 = vsub.f32 %v1765_v43, %v1773_v34 }
0x1208   :  { %v1772_v33 = vpop.xlane.xlu0 %1771 }
0x1209   :  { %v1774_v35 = vmul.f32 0.0625, %v1772_v33  ;;  %v1777_v38 = vmul.f32 %v1775_v18, %v1775_v18 }
0x120b   :  { %v1776_v39 = vsub.f32 %v1766_v9, %v1774_v35  ;;  %v1779_v40 = vsel %vm52_vm0, %v1777_v38, 0.0 }
0x120c   :  { %1780 = vadd.xlane.f32.xlu1 %v1779_v40 }
0x120d   :  { %v1778_v41 = vmul.f32 %v1776_v39, %v1776_v39 }
0x120f   :  { %v1782_v17 = vsel %vm52_vm0, %v1778_v41, 0.0 }
0x1210   :  { %1783 = vadd.xlane.f32.xlu0 %v1782_v17 }
0x1295   :  { %v1781_v8 = vpop.xlane.xlu1 %1780 }
0x1296   :  { %v1785_v3 = vmul.f32 0.0625, %v1781_v8 }
0x1298   :  { %v1787_v44 = vadd.f32 1e-05, %v1785_v3 }
0x1299   :  { %v1784_v0 = vpop.xlane.xlu0 %1783 }
0x129a   :  { %2289 = vrsqrt.f32 %v1787_v44  ;;  %v1786_v32 = vmul.f32 0.0625, %v1784_v0 }
0x129c   :  { %v1788_v45 = vadd.f32 1e-05, %v1786_v32 }
0x129e   :  { %2291 = vrsqrt.f32 %v1788_v45 }
0x12a7   :  { %v2290_v46 = vpop.eup %2289 }
0x12a8   :  { %v1791_v47 = vmul.f32 %v2290_v46, %v1775_v18 }
0x12aa   :  { %v1793_v49 = vmul.f32 %v2652_v48, %v1791_v47 }
0x12ab   :  { %v2292_v51 = vpop.eup %2291 }
0x12ac   :  { %v1795_v37 = vadd.f32 %v2657_v50, %v1793_v49  ;;  %v1792_v21 = vmul.f32 %v2292_v51, %v1776_v39 }
0x12ae   :  { %1797 = vst.msk [vmem:[#allocation2 + $0x8] sm:$0xff] %vm52_vm0, %v1795_v37  ;;  %v1794_v1 = vmul.f32 %v2652_v48, %v1792_v21 }
0x12b0   :  { %v1796_v7 = vadd.f32 %v2657_v50, %v1794_v1 }
0x12b2   :  { %1798 = vst.msk [vmem:[#allocation2 + $0x18] sm:$0xff] %vm52_vm0, %v1796_v7 }
0x12b5   :  { %v1799_v52 = vld [vmem:[#allocation2 + $0x8] sm:$0xff] }
0x12b6   :  { %v1801_v36 = vsel %vm52_vm0, %v1799_v52, 0.0 }
0x12b7   :  { %v1802_v27 = vrot.slane %v1801_v36, 4 }
0x12b9   :  { %v1800_v56 = vld [vmem:[#allocation2 + $0x18] sm:$0xff]  ;;  %v1803_v5 = vadd.f32 %v1802_v27, %v1801_v36 }
0x12ba   :  { %v1808_v57 = vsel %vm52_vm0, %v1800_v56, 0.0 }
0x12bb   :  { %v1804_v58 = vrot.slane %v1803_v5, 2  ;;  %v1809_v60 = vrot.slane %v1808_v57, 4 }
0x12bd   :  { %v1805_v61 = vadd.f32 %v1804_v58, %v1803_v5  ;;  %v1810_v62 = vadd.f32 %v1809_v60, %v1808_v57 }
0x12bf   :  { %v1806_v63 = vrot.slane %v1805_v61, 1  ;;  %v1811_v10 = vrot.slane %v1810_v62, 2 }
0x12c1   :  { %v1812_v11 = vadd.f32 %v1811_v10, %v1810_v62  ;;  %v1807_v48 = vadd.f32 %v1806_v63, %v1805_v61 }
0x12c3   :  { %v1813_v12 = vrot.slane %v1812_v11, 1  ;;  %v1816_v6 = vmul.f32 0.125, %v1807_v48 }
0x12c5   :  { %v1814_v50 = vadd.f32 %v1813_v12, %v1812_v11 }
0x12c7   :  { %v1817_v13 = vmul.f32 0.125, %v1814_v50 }
0x12c9   :  { %v1830_v14 = vsel %vm1829_vm6, %v1817_v13, %v1816_v6 }
0x12ca   :  { %2218 = vmatmul.mubr.msk.f32.vlgmr.msra.gmra.mxu1 %vm52_vm0, %v1830_v14 }
0x138a   :  { %v1899_v16 = vpop.f32.mrf.mxu1 }
0x138b   :  { %v1900_v53 = vadd.f32 %v1966_v15, %v1899_v16 }
0x138c   :  { %v2219_v19 = vpop.f32.mrf.mxu1 }
0x138d   :  { %1904 = vst.msk [vmem:[#allocation3] sm:$0x3] %vm1903_vm7, %v1900_v53 }
0x138e   :  { %2304 = shalt.err (!%p2301_p4)
}
0x138f   :  { %1914 = dma.vmem_to_hbm [thread:$0]  %s1912_s4, 32, %s2841_s15, [#allocation4]  }
0x1390   :  { %2313 = dma.done.wait [#allocation4], 32  }
0x1391   :  { %2314 = vsyncadd [#allocation4], 4294967264 }
0x1392   :  { %1918 = vsyncpa [#allocation4], 1 }

</bundles_post_ra>
